<compile_context>
chip_gen: v7x
topology: tpu7x:2x2x1
jax: 0.10.0
libtpu: 0.0.40
codegen_flags: <defaults>
</compile_context>

<pallas_src>
import functools

import jax
import jax.numpy as jnp
from jax import lax
from jax.experimental import pallas as pl
from jax.experimental.pallas import tpu as pltpu


def _round_up(x, m):
    return (x + m - 1) // m * m


def _vmem_cap_bytes():
    """Generation-aware scoped-VMEM cap: v7x has 64 MiB/TC, v5e/v6e 128 MiB."""
    try:
        kind = jax.devices()[0].device_kind.lower()
        if "v5" in kind or "v6" in kind:
            return 100 << 20
    except Exception:
        pass
    return 48 << 20  # safe on v7x (and everything else)


# ----------------------------------------------------------------------------
# Pallas kernel: fused stride-1 KhxKw conv (shifted MXU matmuls) + bias + act
# ----------------------------------------------------------------------------
def _conv_shift_kernel(x_ref, w_ref, b_ref, o_ref, *, t_oh, k_h, k_w, wp8, wo,
                       cout_valid, slope):
    """One (batch, row-block) grid step.

    x_ref : (Hp_s, Wp8, C)        whole padded image of this batch element
    w_ref : (Kh*Kw, C, Cout_p)    weights, one (C, Cout_p) slice per shift
    b_ref : (1, Cout_p)           bias (f32)
    o_ref : (t_oh, Wo, Cout)      output row block (exact, unpadded channels)
    """
    c = x_ref.shape[-1]
    cout_p = w_ref.shape[-1]
    m = t_oh * wp8
    row0 = pl.program_id(1) * t_oh

    # Row slab covering the receptive field of this output row block; flatten
    # (rows, Wp8) onto the sublane axis (free: wp8 % 8 == 0) so every (kh, kw)
    # shift becomes a static slice feeding the MXU.
    slab = x_ref[pl.ds(row0, t_oh + k_h), :, :]            # (t_oh+Kh, Wp8, C)
    slab = slab.reshape((t_oh + k_h) * wp8, c)

    acc = jnp.zeros((m, cout_p), jnp.float32)
    for kh in range(k_h):                                  # static unroll
        for kw in range(k_w):
            start = kh * wp8 + kw
            a = slab[start:start + m, :]                   # (m, C), bf16
            acc = acc + jnp.dot(a, w_ref[kh * k_w + kw],
                                preferred_element_type=jnp.float32)

    acc = acc + b_ref[...]                                 # bias in f32
    if slope is not None:                                  # LeakyReLU epilogue
        acc = jnp.where(acc > 0, acc, acc * slope)

    y = acc.reshape(t_oh, wp8, cout_p)[:, :wo, :cout_valid]
    o_ref[...] = y.astype(o_ref.dtype)


# ----------------------------------------------------------------------------
# Conv2d(k=4, pad=1, stride in {1,2}) + bias + optional LeakyReLU, NHWC
# ----------------------------------------------------------------------------
def conv2d_pallas(x_nhwc, w_oihw, bias, *, stride, slope=None,
                  out_dtype=jnp.bfloat16, acc_budget_bytes=8 << 20):
    N, H, W, Cin = x_nhwc.shape
    Cout, Cin_w, Kh, Kw = w_oihw.shape
    assert Cin == Cin_w and Kh == 4 and Kw == 4 and stride in (1, 2)
    Ho = (H + 2 - Kh) // stride + 1
    Wo = (W + 2 - Kw) // stride + 1

    w_hwio = jnp.transpose(w_oihw, (2, 3, 1, 0))           # (4, 4, Cin, Cout)
    xp = jnp.pad(x_nhwc, ((0, 0), (1, 1), (1, 1), (0, 0)))

    if stride == 2:
        # Space-to-depth: stride-2 k=4 conv == stride-1 k=2 conv on 4*Cin chans.
        assert H % 2 == 0 and W % 2 == 0
        Hp, Wp = H + 2, W + 2
        xp = xp.reshape(N, Hp // 2, 2, Wp // 2, 2, Cin)
        xp = xp.transpose(0, 1, 3, 2, 4, 5).reshape(N, Hp // 2, Wp // 2, 4 * Cin)
        w_k = w_hwio.reshape(2, 2, 2, 2, Cin, Cout)
        w_k = w_k.transpose(0, 2, 1, 3, 4, 5).reshape(2, 2, 4 * Cin, Cout)
        k_h = k_w = 2
    else:
        w_k = w_hwio
        k_h = k_w = 4

    C = xp.shape[-1]
    Hs, Ws = xp.shape[1], xp.shape[2]
    assert Hs == Ho + k_h - 1 and Ws == Wo + k_w - 1

    # Storage padding: one extra zero row (keeps slab reads in-bounds) and
    # width rounded to a multiple of 8 so the in-kernel flatten is layout-free.
    hp_s = Ho + k_h
    wp8 = _round_up(Ws, 8)
    xp = jnp.pad(xp, ((0, 0), (0, hp_s - Hs), (0, wp8 - Ws), (0, 0)))
    xp = xp.astype(jnp.bfloat16)

    # Lane-pad only the Cout=1 head (inside VMEM; HBM output stays unpadded).
    cout_p = Cout if Cout >= 8 else 128
    if cout_p != Cout:
        w_k = jnp.pad(w_k, ((0, 0), (0, 0), (0, 0), (0, cout_p - Cout)))
        b_p = jnp.pad(bias, (0, cout_p - Cout))
    else:
        b_p = bias
    w_k = w_k.reshape(k_h * k_w, C, cout_p).astype(jnp.bfloat16)
    b_p = b_p.astype(jnp.float32).reshape(1, cout_p)

    # Row-block size: largest divisor of Ho whose accumulator + slab fit the
    # budget; keep >= 2 parallel grid entries when batch == 1 (v7x dual-TC).
    want_blocks = 2 if N < 2 else 1
    c_lanes = _round_up(C, 128)
    co_lanes = _round_up(cout_p, 128)

    def t_bytes(t):
        return (2 * t * wp8 * co_lanes * 4                # acc + dot temp (f32)
                + 2 * (t + k_h) * wp8 * c_lanes * 2)      # slab + shifted slice

    t_oh = 1
    for d in range(Ho, 0, -1):
        if Ho % d:
            continue
        if Ho // d < want_blocks and d != 1:
            continue
        if t_bytes(d) <= acc_budget_bytes:
            t_oh = d
            break
    n_blocks = Ho // t_oh

    out_isize = jnp.dtype(out_dtype).itemsize
    x_blk = hp_s * wp8 * c_lanes * 2
    w_blk = k_h * k_w * _round_up(C, 16) * co_lanes * 2
    o_blk = t_oh * _round_up(Wo, 8) * _round_up(Cout, 128) * out_isize
    vmem = 2 * (x_blk + w_blk + o_blk) + t_bytes(t_oh) + (2 << 20)
    vmem = int(min(max(vmem, 1 << 20), _vmem_cap_bytes()))

    cost = pl.CostEstimate(
        flops=2 * N * Ho * wp8 * k_h * k_w * C * cout_p,
        transcendentals=0,
        bytes_accessed=(xp.size * 2 + w_k.size * 2 + b_p.size * 4
                        + N * Ho * Wo * Cout * out_isize),
    )

    kernel = functools.partial(
        _conv_shift_kernel, t_oh=t_oh, k_h=k_h, k_w=k_w, wp8=wp8, wo=Wo,
        cout_valid=Cout, slope=slope)

    out = pl.pallas_call(
        kernel,
        out_shape=jax.ShapeDtypeStruct((N, Ho, Wo, Cout), out_dtype),
        grid=(N, n_blocks),
        in_specs=[
            # Whole padded image of one batch element (constant across row
            # blocks -> fetched from HBM once per batch element).
            pl.BlockSpec((None, hp_s, wp8, C), lambda n, i: (n, 0, 0, 0)),
            pl.BlockSpec((k_h * k_w, C, cout_p), lambda n, i: (0, 0, 0)),
            pl.BlockSpec((1, cout_p), lambda n, i: (0, 0)),
        ],
        out_specs=pl.BlockSpec((None, t_oh, Wo, Cout), lambda n, i: (n, i, 0, 0)),
        compiler_params=pltpu.CompilerParams(
            dimension_semantics=("parallel", "parallel"),
            vmem_limit_bytes=vmem,
        ),
        cost_estimate=cost,
    )(xp, w_k, b_p)
    return out


# ----------------------------------------------------------------------------
# Parameters (deterministic, PyTorch-Conv2d-style init) + spectral norm
# ----------------------------------------------------------------------------
def _init_conv(key, cout, cin, k=4):
    kw_key, b_key = jax.random.split(key)
    fan_in = cin * k * k
    bound = 1.0 / jnp.sqrt(fan_in)
    w = jax.random.uniform(kw_key, (cout, cin, k, k), jnp.float32, -bound, bound)
    b = jax.random.uniform(b_key, (cout,), jnp.float32, -bound, bound)
    return w, b


def spectral_normalize(w_oihw, n_iter=30):
    """Spectral normalization of the conv weight viewed as (Cout, Cin*Kh*Kw).

    torch.nn.utils.spectral_norm uses one power iteration per forward with a
    persistent random u; here a converged deterministic power iteration is
    used (steady-state sigma)."""
    cout = w_oihw.shape[0]
    w2d = w_oihw.reshape(cout, -1)
    u = jnp.ones((cout,), jnp.float32) / jnp.sqrt(cout)
    v = w2d.T @ u
    for _ in range(n_iter):
        v = w2d.T @ u
        v = v / (jnp.linalg.norm(v) + 1e-12)
        u = w2d @ v
        u = u / (jnp.linalg.norm(u) + 1e-12)
    sigma = u @ (w2d @ v)
    return w_oihw / sigma


def init_edge_discriminator_params(key, in_channels=2):
    specs = [
        (in_channels, 64, 2),
        (64, 128, 2),
        (128, 256, 2),
        (256, 512, 1),
        (512, 1, 1),
    ]
    keys = jax.random.split(key, len(specs))
    params = []
    for k_i, (cin, cout, stride) in zip(keys, specs):
        w, b = _init_conv(k_i, cout, cin)
        w = spectral_normalize(w)
        params.append((w, b, stride))
    return params


# ----------------------------------------------------------------------------
# Full forward pass (matches EdgeDiscriminator.forward)
# ----------------------------------------------------------------------------
def edge_discriminator_forward(params, input_edges_nchw, edge_nchw):
    """cat on channels, 5 spectral-norm convs, LeakyReLU(0.2) after the first
    four.  Inputs/outputs are NCHW; activations run in bf16 with f32 accum."""
    x = jnp.concatenate([input_edges_nchw, edge_nchw], axis=1)   # (N, 2, H, W)
    x = jnp.transpose(x, (0, 2, 3, 1))                           # NCHW -> NHWC

    n_layers = len(params)
    for idx, (w, b, stride) in enumerate(params):
        is_last = idx == n_layers - 1
        x = conv2d_pallas(
            x, w, b, stride=stride,
            slope=None if is_last else 0.2,                      # last: no act
            out_dtype=jnp.float32 if is_last else jnp.bfloat16,  # logits in f32
        )
    return jnp.transpose(x, (0, 3, 1, 2))                        # NHWC -> NCHW


# ----------------------------------------------------------------------------
# Pure-JAX (XLA) f32 reference for validation
# ----------------------------------------------------------------------------
def _reference_forward(params, input_edges_nchw, edge_nchw):
    x = jnp.concatenate([input_edges_nchw, edge_nchw], axis=1)
    x = jnp.transpose(x, (0, 2, 3, 1)).astype(jnp.float32)
    n_layers = len(params)
    for idx, (w, b, stride) in enumerate(params):
        w_hwio = jnp.transpose(w, (2, 3, 1, 0)).astype(jnp.float32)
        x = lax.conv_general_dilated(
            x, w_hwio, window_strides=(stride, stride),
            padding=((1, 1), (1, 1)),
            dimension_numbers=("NHWC", "HWIO", "NHWC"))
        x = x + b.astype(jnp.float32)
        if idx != n_layers - 1:
            x = jnp.where(x > 0, x, 0.2 * x)
    return jnp.transpose(x, (0, 3, 1, 2))


if __name__ == "__main__":
    key = jax.random.PRNGKey(0)
    pkey, xkey, ekey = jax.random.split(key, 3)

    # Small shapes: batch=2, 1-channel edge maps, 32x32 spatial.
    # 32 -> 16 -> 8 -> 4 -> 3 -> 2 : final patch logits (2, 1, 2, 2).
    input_edges = jax.random.uniform(xkey, (2, 1, 32, 32), jnp.float32)
    edge = jax.random.uniform(ekey, (2, 1, 32, 32), jnp.float32)

    params = init_edge_discriminator_params(pkey, in_channels=2)

    out = jax.block_until_ready(
        edge_discriminator_forward(params, input_edges, edge))
    assert out.shape == (2, 1, 2, 2), out.shape
    assert bool(jnp.all(jnp.isfinite(out)))

    # Loose tolerance: kernel runs bf16 activations / f32 accumulation vs the
    # f32 XLA reference; this still catches any indexing / layout bug.
    ref = jax.block_until_ready(_reference_forward(params, input_edges, edge))
    err = float(jnp.max(jnp.abs(out.astype(jnp.float32) - ref)))
    tol = 0.03 + 0.06 * float(jnp.max(jnp.abs(ref)))
    assert err <= tol, (err, tol)

    print("KERNEL_OK")
</pallas_src>

<mosaic_0001>
module attributes {stable_mosaic.version = 11 : i64} {
  func.func @_conv_shift_kernel(%arg0: i32, %arg1: i32, %arg2: memref<1x18x24x8xbf16, #tpu.memory_space<vmem>>, %arg3: memref<4x8x64xbf16, #tpu.memory_space<vmem>>, %arg4: memref<1x64xf32, #tpu.memory_space<vmem>>, %arg5: memref<1x16x16x64xbf16, #tpu.memory_space<vmem>>) attributes {dimension_semantics = [#tpu.dimension_semantics<parallel>, #tpu.dimension_semantics<parallel>], iteration_bounds = array<i64: 2, 1>, scalar_prefetch = 0 : i64, scratch_operands = 0 : i64, tpu.core_type = #tpu.core_type<tc>, window_params = [{transform_indices = @transform_0, window_bounds = array<i64: 1, 18, 24, 8>}, {pipeline_mode = #tpu.pipeline_mode<synchronous>, transform_indices = @transform_1, window_bounds = array<i64: 4, 8, 64>}, {pipeline_mode = #tpu.pipeline_mode<synchronous>, transform_indices = @transform_2, window_bounds = array<i64: 1, 64>}, {transform_indices = @transform_3, window_bounds = array<i64: 1, 16, 16, 64>}]} {
    %c16_i32 = arith.constant 16 : i32
    %0 = arith.muli %arg1, %c16_i32 : i32
    %c0 = arith.constant 0 : index
    %1 = arith.index_cast %0 : i32 to index
    %c0_0 = arith.constant 0 : index
    %c0_1 = arith.constant 0 : index
    %2 = vector.load %arg2[%c0, %1, %c0_0, %c0_1] : memref<1x18x24x8xbf16, #tpu.memory_space<vmem>>, vector<1x18x24x8xbf16>
    %3 = vector.shape_cast %2 : vector<1x18x24x8xbf16> to vector<18x24x8xbf16>
    %4 = vector.shape_cast %3 : vector<18x24x8xbf16> to vector<432x8xbf16>
    %cst = arith.constant 0.000000e+00 : f32
    %5 = vector.broadcast %cst : f32 to vector<384x64xf32>
    %6 = vector.extract_strided_slice %4 {offsets = [0, 0], sizes = [384, 8], strides = [1, 1]} : vector<432x8xbf16> to vector<384x8xbf16>
    %c0_2 = arith.constant 0 : index
    %c0_3 = arith.constant 0 : index
    %c0_4 = arith.constant 0 : index
    %7 = vector.load %arg3[%c0_2, %c0_3, %c0_4] : memref<4x8x64xbf16, #tpu.memory_space<vmem>>, vector<1x8x64xbf16>
    %8 = vector.shape_cast %7 : vector<1x8x64xbf16> to vector<8x64xbf16>
    %cst_5 = arith.constant dense<0.000000e+00> : vector<384x64xf32>
    %9 = tpu.matmul %6, %8, %cst_5 {dimension_numbers = #tpu.dot_dimension_numbers<[1], [0], [0], [1], [0, 0, 1, 1], [], []>} : vector<384x8xbf16>, vector<8x64xbf16>, vector<384x64xf32> -> vector<384x64xf32>
    %10 = arith.addf %5, %9 : vector<384x64xf32>
    %11 = vector.extract_strided_slice %4 {offsets = [1, 0], sizes = [384, 8], strides = [1, 1]} : vector<432x8xbf16> to vector<384x8xbf16>
    %c1 = arith.constant 1 : index
    %c0_6 = arith.constant 0 : index
    %c0_7 = arith.constant 0 : index
    %12 = vector.load %arg3[%c1, %c0_6, %c0_7] : memref<4x8x64xbf16, #tpu.memory_space<vmem>>, vector<1x8x64xbf16>
    %13 = vector.shape_cast %12 : vector<1x8x64xbf16> to vector<8x64xbf16>
    %cst_8 = arith.constant dense<0.000000e+00> : vector<384x64xf32>
    %14 = tpu.matmul %11, %13, %cst_8 {dimension_numbers = #tpu.dot_dimension_numbers<[1], [0], [0], [1], [0, 0, 1, 1], [], []>} : vector<384x8xbf16>, vector<8x64xbf16>, vector<384x64xf32> -> vector<384x64xf32>
    %15 = arith.addf %10, %14 : vector<384x64xf32>
    %16 = vector.extract_strided_slice %4 {offsets = [24, 0], sizes = [384, 8], strides = [1, 1]} : vector<432x8xbf16> to vector<384x8xbf16>
    %c2 = arith.constant 2 : index
    %c0_9 = arith.constant 0 : index
    %c0_10 = arith.constant 0 : index
    %17 = vector.load %arg3[%c2, %c0_9, %c0_10] : memref<4x8x64xbf16, #tpu.memory_space<vmem>>, vector<1x8x64xbf16>
    %18 = vector.shape_cast %17 : vector<1x8x64xbf16> to vector<8x64xbf16>
    %cst_11 = arith.constant dense<0.000000e+00> : vector<384x64xf32>
    %19 = tpu.matmul %16, %18, %cst_11 {dimension_numbers = #tpu.dot_dimension_numbers<[1], [0], [0], [1], [0, 0, 1, 1], [], []>} : vector<384x8xbf16>, vector<8x64xbf16>, vector<384x64xf32> -> vector<384x64xf32>
    %20 = arith.addf %15, %19 : vector<384x64xf32>
    %21 = vector.extract_strided_slice %4 {offsets = [25, 0], sizes = [384, 8], strides = [1, 1]} : vector<432x8xbf16> to vector<384x8xbf16>
    %c3 = arith.constant 3 : index
    %c0_12 = arith.constant 0 : index
    %c0_13 = arith.constant 0 : index
    %22 = vector.load %arg3[%c3, %c0_12, %c0_13] : memref<4x8x64xbf16, #tpu.memory_space<vmem>>, vector<1x8x64xbf16>
    %23 = vector.shape_cast %22 : vector<1x8x64xbf16> to vector<8x64xbf16>
    %cst_14 = arith.constant dense<0.000000e+00> : vector<384x64xf32>
    %24 = tpu.matmul %21, %23, %cst_14 {dimension_numbers = #tpu.dot_dimension_numbers<[1], [0], [0], [1], [0, 0, 1, 1], [], []>} : vector<384x8xbf16>, vector<8x64xbf16>, vector<384x64xf32> -> vector<384x64xf32>
    %25 = arith.addf %20, %24 : vector<384x64xf32>
    %c0_15 = arith.constant 0 : index
    %c0_16 = arith.constant 0 : index
    %26 = vector.load %arg4[%c0_15, %c0_16] : memref<1x64xf32, #tpu.memory_space<vmem>>, vector<1x64xf32>
    %27 = vector.broadcast %26 : vector<1x64xf32> to vector<384x64xf32>
    %28 = arith.addf %25, %27 : vector<384x64xf32>
    %cst_17 = arith.constant 0.000000e+00 : f32
    %29 = vector.broadcast %cst_17 : f32 to vector<384x64xf32>
    %30 = arith.cmpf ogt, %28, %29 : vector<384x64xf32>
    %cst_18 = arith.constant 2.000000e-01 : f32
    %31 = vector.broadcast %cst_18 : f32 to vector<384x64xf32>
    %32 = arith.mulf %28, %31 : vector<384x64xf32>
    %33 = arith.select %30, %28, %32 : vector<384x64xi1>, vector<384x64xf32>
    %34 = vector.shape_cast %33 : vector<384x64xf32> to vector<16x24x64xf32>
    %35 = vector.extract_strided_slice %34 {offsets = [0, 0, 0], sizes = [16, 16, 64], strides = [1, 1, 1]} : vector<16x24x64xf32> to vector<16x16x64xf32>
    %36 = arith.truncf %35 : vector<16x16x64xf32> to vector<16x16x64xbf16>
    %c0_19 = arith.constant 0 : index
    %c0_20 = arith.constant 0 : index
    %c0_21 = arith.constant 0 : index
    %c0_22 = arith.constant 0 : index
    %37 = vector.load %arg5[%c0_19, %c0_20, %c0_21, %c0_22] : memref<1x16x16x64xbf16, #tpu.memory_space<vmem>>, vector<1x16x16x64xbf16>
    %38 = vector.shape_cast %37 : vector<1x16x16x64xbf16> to vector<16x16x64xbf16>
    %39 = vector.shape_cast %36 : vector<16x16x64xbf16> to vector<1x16x16x64xbf16>
    tpu.vector_store %arg5[%c0_19, %c0_20, %c0_21, %c0_22], %39 {strides = array<i32>} : memref<1x16x16x64xbf16, #tpu.memory_space<vmem>>, vector<1x16x16x64xbf16>,
    return
  }
  func.func @transform_0(%arg0: i32, %arg1: i32) -> (i32, i32, i32, i32) {
    %c0_i32 = arith.constant 0 : i32
    %c0_i32_0 = arith.constant 0 : i32
    %c0_i32_1 = arith.constant 0 : i32
    %c0_i32_2 = arith.constant 0 : i32
    return %arg0, %c0_i32, %c0_i32_0, %c0_i32_1 : i32, i32, i32, i32
  }
  func.func @transform_1(%arg0: i32, %arg1: i32) -> (i32, i32, i32) {
    %c0_i32 = arith.constant 0 : i32
    %c0_i32_0 = arith.constant 0 : i32
    %c0_i32_1 = arith.constant 0 : i32
    %c0_i32_2 = arith.constant 0 : i32
    return %c0_i32, %c0_i32_0, %c0_i32_1 : i32, i32, i32
  }
  func.func @transform_2(%arg0: i32, %arg1: i32) -> (i32, i32) {
    %c0_i32 = arith.constant 0 : i32
    %c0_i32_0 = arith.constant 0 : i32
    %c0_i32_1 = arith.constant 0 : i32
    return %c0_i32, %c0_i32_0 : i32, i32
  }
  func.func @transform_3(%arg0: i32, %arg1: i32) -> (i32, i32, i32, i32) {
    %c0_i32 = arith.constant 0 : i32
    %c0_i32_0 = arith.constant 0 : i32
    %c0_i32_1 = arith.constant 0 : i32
    return %arg0, %arg1, %c0_i32, %c0_i32_0 : i32, i32, i32, i32
  }
}

</mosaic_0001>

<bundles_post_ra>
// kernel: tpu_custom_call.1
= control target key start
LH: loop header
LB: loop body
LE: loop exit
PB: predicated region body
PF: predicated region fallthrough
CT: control target
= control target key end

     0   :  { %8 = vsyncpa [#allocation3], 0  ;;  %s4067_s0 = inlined_call_operand.vmem [shape: bf16[2,18,24,8], index: 0, kind: input, shape index: {}]   ;;  %s4068_s1 = inlined_call_operand.vmem [shape: bf16[4,8,64], index: 1, kind: input, shape index: {}]   ;;  %s4069_s2 = inlined_call_operand.vmem [shape: f32[1,64], index: 2, kind: input, shape index: {}]   ;;  %s4070_s3 = inlined_call_operand.hbm [shape: bf16[2,16,16,64], index: 3, kind: output, shape index: {}]  }
   0x1   :  { %10 = vsyncpa [#allocation3 + $0x1], 0  ;;  %s3079_s12 = smov 0   ;;  %s3081_s13 = smov 0  }
   0x2   :  { %s3083_s14 = smov 0   ;;  %s3085_s15 = smov 0  }
   0x3   :  { %s3087_s16 = smov 0   ;;  %s3089_s17 = smov 0  }
   0x4 LB: > { %s2337_s18 = sadd.s32 4294967295, %s3054_s17   ;;  %s2338_s19 = sadd.s32 4294967294, %s3054_s17   ;;  %s3054_s17 = sphi %s3089_s17, %s16_s17   ;;  %s3050_s16 = sphi %s3087_s16, %s4146_s16   ;;  %s3046_s15 = sphi %s3085_s15, %s4145_s15   ;;  %s3042_s14 = sphi %s3083_s14, %s4144_s14   ;;  %s3038_s13 = sphi %s3081_s13, %s4143_s13   ;;  %s3034_s12 = sphi %s3079_s12, %s4142_s12  }
   0x5   : > { %s28_s20 = sadd.s32 1, %s3050_s16  ;;  %s105_s21 = sadd.s32 1, %s3042_s14 }
   0x6   : > { %p30_p0 = scmp.ge.s32.totalorder %s28_s20, 2  ;;  %p115_p1 = scmp.ne.s32.totalorder %s3042_s14, %s3038_s13 }
   0x7   : > { %p116_p2 = scmp.eq.s32.totalorder %s2337_s18, 1  ;;  %p121_p3 = scmp.ne.s32.totalorder %s3038_s13, %s3034_s12 }
   0x8   : > { %s4148_s20 = smov (%p30_p0, %s28_s20), 0  ;;  %p122_p5 = scmp.eq.s32.totalorder %s2338_s19, 1 }
   0x9   : > { %p3119_p4 = por %p116_p2, %p115_p1  ;;  %s100_s23 = ssub.s32 %s3050_s16, %s4148_s20 }
   0xa   : > { %p2341_p6 = scmp.ge.s32.totalorder %s3054_s17, 1  ;;  %p103_p7 = scmp.eq.s32.totalorder %s100_s23, 0 }
   0xb   : > { %p3126_p8 = por %p122_p5, %p121_p3  ;;  %p154_p9 = scmp.lt.s32.totalorder %s3054_s17, 3 }
   0xc   : > { %s3132_s25 = scalar_select %p103_p7, %s3042_s14, %s105_s21  }
   0xd   : > { %p155_p10 = pnand %p2341_p6, %p154_p9 }
   0xf   : > { %158 = sbr.rel (%p155_p10) target bundleno = 464 (0x1d0), region = 32 }
  0x16   : > { %v2344_v0 = vld [vmem:[%s4068_s1 + $0x4] sm:$0xf]  ;;  %vm637_vm0 = vcmask 1043456   ;;  %v241_v1 = vld [vmem:[%s4068_s1] sm:$0xf]  ;;  %p178_p11 = scmp.lt.s32.totalorder %s3046_s15, 1 }
  0x17   : > { %2864 = vmatprep.subr.msk.bf16.mxu0 %vm637_vm0, %v2344_v0  ;;  %2865 = vmatprep.subr.msk.bf16.mxu1 %vm637_vm0, %v241_v1  ;;  %v639_v2 = vsel %vm637_vm0, %v2344_v0, 0  ;;  %v899_v3 = vsel %vm637_vm0, %v241_v1, 0  ;;  %v2418_v4 = vld [vmem:[%s4068_s1 + $0x8] sm:$0xf]  ;;  %v2467_v5 = vld [vmem:[%s4068_s1 + $0xc] sm:$0xf] }
  0x18   : > { %2665 = vmatpush3.bf16.msra.mxu0 %v639_v2  ;;  %2715 = vmatpush3.bf16.msra.mxu1 %v899_v3  ;;  %s179_s30 = scalar_select %p178_p11, %s3046_s15, 1  ;;  %vm564_vm1 = vcmask 64512   ;;  %vm367_vm2 = vsmask.f32 7424  ;;  %v1706_v7 = vsel %vm637_vm0, %v2467_v5, 0  ;;  %v1213_v38 = vsel %vm637_vm0, %v2418_v4, 0 }
  0x19   : > { %2866 = vmatprep.subr.msk.bf16.mxu0 %vm637_vm0, %v2418_v4  ;;  %2867 = vmatprep.subr.msk.bf16.mxu1 %vm637_vm0, %v2467_v5  ;;  %s175_s21 = sand.u32 1, %s3038_s13   ;;  %vm2212_vm4 = vcmask 519168   ;;  %s2563_s27 = sshll.u32 %s3046_s15, 11 }
  0x1a   : > { %s2868_s8 = smul.u32 216, %s179_s30  ;;  %s2342_s23 = sshll.u32 %s175_s21, 7 }
  0x1b   : > { %s3889_s26 = scalar_lea.vmem [#allocation2], %s2342_s23  ;;  %s4013_s4 = scalar_lea.hbm %s4070_s3, %s2563_s27 }
  0x1c   : > { %s3157_s11 = scalar_lea.vmem %s4067_s0, %s2868_s8  ;;  %s2262_s28 = sshll.u32 %s3889_s26, 4  ;;  %s4015_s28 = int_to_ptr.vmem [resolvable:$true] %s2262_s28 }
  0x1d   : > { %v2926_v6 = vld [vmem:[%s3157_s11] sm:$0xff]   ;;  %v191_v8 = vld [vmem:[%s3157_s11 + $0x8] sm:$0xf]  ;;  %v192_v9 = vld [vmem:[%s3157_s11 + $0xc] sm:$0xf]  ;;  %s4021_s15 = scalar_lea.sflag [#allocation3], %s175_s21 }
  0x1e   : > { %v193_v10 = vld [vmem:[%s3157_s11 + $0x10] sm:$0xf]  ;;  %2716 = vmatprep.mubr.msk.bf16.mxu1 %vm564_vm1, %v2926_v6  ;;  %v2346_v11 = vcombine.low %v191_v8, %v192_v9  ;;  %v369_v12 = vshrl.u32 %v2926_v6, 16  ;;  %v371_v13 = vshll.u32 %v2926_v6, 16  ;;  %v194_v15 = vld [vmem:[%s3157_s11 + $0x14] sm:$0xf] }
  0x1f   : > { %v3165_v14 = vcombine.low %v192_v9, %v193_v10  ;;  %v195_v16 = vld [vmem:[%s3157_s11 + $0x18] sm:$0xf]  ;;  %v2347_v17 = vcombine.low %v193_v10, %v194_v15  ;;  %v196_v18 = vld [vmem:[%s3157_s11 + $0x1c] sm:$0xf]  ;;  %v197_v19 = vld [vmem:[%s3157_s11 + $0x20] sm:$0xf] }
  0x20   : > { %v3172_v20 = vld [vmem:[%s3157_s11 + $0x24] sm:$0xf]  ;;  %v3174_v21 = vcombine.low %v194_v15, %v195_v16  ;;  %v373_v22 = vrot.slane %v371_v13, 1  ;;  %v376_v23 = vshll.u32 %v2346_v11, 16  ;;  %v380_v24 = vshrl.u32 %v2346_v11, 16  ;;  %2717 = vmatmul.mubr.msk.bf16.vlgmr.msra.gmra.mrb[0].mxu1 %vm564_vm1, %v2346_v11  ;;  %s2976_s5 = scalar_lea.vmem %s4015_s28, 2048 }
  0x21   : > { %v2348_v25 = vcombine.low %v195_v16, %v196_v18  ;;  %v3178_v26 = vld [vmem:[%s3157_s11 + $0x28] sm:$0xf]  ;;  %v384_v27 = vshll.u32 %v2347_v17, 16  ;;  %2815 = vmatpush3.bf16.msra.mxu1 %v1706_v7  ;;  %2720 = vmatprep.mubr.msk.bf16.mxu1 %vm564_vm1, %v2347_v17  ;;  %v388_v28 = vshrl.u32 %v2347_v17, 16  ;;  %v2349_v29 = vcombine.low %v197_v19, %v3172_v20  ;;  %v3185_v31 = vld [vmem:[%s3157_s11 + $0x2c] sm:$0xf]  ;;  %p2977_p12 = scmp.ne.s32.totalorder %s4015_s28, %s2976_s5 }
  0x22   : > { %4096 = vst [vmem:[#allocation5_spill] sm:$0xff] %v3174_v21  ;;  %v3182_v30 = vcombine.low %v196_v18, %v197_v19  ;;  %v374_v32 = vor.u32 %v373_v22, %v369_v12  ;;  %v378_v33 = vrot.slane %v376_v23, 1  ;;  %v3188_v35 = vld [vmem:[%s3157_s11 + $0x30] sm:$0xf]  ;;  %v3191_v36 = vld [vmem:[%s3157_s11 + $0x34] sm:$0xf]  ;;  %v2350_v40 = vcombine.low %v3178_v26, %v3185_v31 }
  0x23   : > { %v392_v34 = vshll.u32 %v2348_v25, 16  ;;  %v386_v37 = vrot.slane %v384_v27, 1  ;;  %v400_v39 = vshll.u32 %v2349_v29, 16  ;;  %v396_v44 = vshrl.u32 %v2348_v25, 16  ;;  %v3198_v45 = vld [vmem:[%s3157_s11 + $0x38] sm:$0xf]  ;;  %p2978_p13 = pnand %p2977_p12, %p3119_p4 }
  0x24   : > { %v379_v41 = vsel %vm367_vm2, %v374_v32, %v378_v33  ;;  %v382_v42 = vor.u32 %v380_v24, %v378_v33  ;;  %v3201_v46 = vld [vmem:[%s3157_s11 + $0x3c] sm:$0xf]  ;;  %v404_v48 = vshrl.u32 %v2349_v29, 16  ;;  %v408_v49 = vshll.u32 %v2350_v40, 16  ;;  %v3215_v56 = vld [vmem:[%s3157_s11 + $0x40] sm:$0xf] }
  0x25   : > { %v394_v43 = vrot.slane %v392_v34, 1  ;;  %2666 = vmatprep.mubr.msk.bf16.mxu0 %vm564_vm1, %v379_v41  ;;  %v390_v47 = vor.u32 %v388_v28, %v386_v37  ;;  %v2351_v50 = vcombine.low %v3188_v35, %v3191_v36  ;;  %v402_v53 = vrot.slane %v400_v39, 1  ;;  %v3218_v57 = vld [vmem:[%s3157_s11 + $0x44] sm:$0xf]  ;;  %v3222_v61 = vld [vmem:[%s3157_s11 + $0x48] sm:$0xf]  ;;  %p2979_p0 = pneg %p2978_p13 }
  0x26   : > { %v387_v51 = vsel %vm367_vm2, %v382_v42, %v386_v37  ;;  %v3211_v54 = vcombine.low %v3198_v45, %v3201_v46  ;;  %v410_v59 = vrot.slane %v408_v49, 1  ;;  %v3225_v62 = vld [vmem:[%s3157_s11 + $0x4c] sm:$0xf]  ;;  %v412_v63 = vshrl.u32 %v2350_v40, 16  ;;  %v3229_v0 = vld [vmem:[%s3157_s11 + $0x50] sm:$0xf] }
  0x27   : > { %2667 = vmatmul.mubr.msk.bf16.vlgmr.msra.gmra.mrb[0].mxu0 %vm564_vm1, %v387_v51  ;;  %v395_v52 = vsel %vm367_vm2, %v390_v47, %v394_v43  ;;  %v398_v55 = vor.u32 %v396_v44, %v394_v43  ;;  %v406_v58 = vor.u32 %v404_v48, %v402_v53  ;;  %v416_v60 = vshll.u32 %v2351_v50, 16  ;;  %v3232_v1 = vld [vmem:[%s3157_s11 + $0x54] sm:$0xf]  ;;  %v3236_v4 = vld [vmem:[%s3157_s11 + $0x58] sm:$0xf]  ;;  %s3056_s6 = smov [#allocation2]  }
  0x28   : > { %2765 = vmatpush3.bf16.msra.mxu0 %v1213_v38  ;;  %2670 = vmatprep.mubr.msk.bf16.mxu0 %vm564_vm1, %v395_v52  ;;  %v420_v2 = vshrl.u32 %v2351_v50, 16  ;;  %v424_v3 = vshll.u32 %v3211_v54, 16  ;;  %v3239_v5 = vld [vmem:[%s3157_s11 + $0x5c] sm:$0xf]  ;;  %v3244_v7 = vcombine.low %v3215_v56, %v3218_v57  ;;  %v3248_v8 = vcombine.low %v3222_v61, %v3225_v62  ;;  %v3256_v12 = vld [vmem:[%s3157_s11 + $0x68] sm:$0xf] }
  0x29   : > { %2721 = vmatmul.mubr.msk.bf16.gmra.mrb[4].mxu1 %vm564_vm1, %v2348_v25  ;;  %v403_v6 = vsel %vm367_vm2, %v398_v55, %v402_v53  ;;  %v411_v9 = vsel %vm367_vm2, %v406_v58, %v410_v59  ;;  %v418_v10 = vrot.slane %v416_v60, 1  ;;  %v3253_v11 = vcombine.low %v3229_v0, %v3232_v1  ;;  %v3259_v13 = vld [vmem:[%s3157_s11 + $0x6c] sm:$0xf]  ;;  %v3266_v16 = vld [vmem:[%s3157_s11 + $0x60] sm:$0xf]  ;;  %s2980_s7 = sshll.u32 %s3056_s6, 4  ;;  %s2981_s7 = int_to_ptr.vmem [resolvable:$false] %s2980_s7 }
  0x2a   : > { %2724 = vmatprep.mubr.msk.bf16.mxu1 %vm564_vm1, %v2349_v29  ;;  %4097 = vst [vmem:[#allocation6_spill] sm:$0xff] %v3259_v13  ;;  %v3263_v15 = vcombine.low %v3236_v4, %v3239_v5  ;;  %v3269_v17 = vld [vmem:[%s3157_s11 + $0x64] sm:$0xf]  ;;  %v414_v18 = vor.u32 %v412_v63, %v410_v59  ;;  %v426_v22 = vrot.slane %v424_v3, 1  ;;  %v3273_v23 = vld [vmem:[%s3157_s11 + $0x78] sm:$0xf]  ;;  %v3283_v28 = vcombine.low %v3256_v12, %v3259_v13  ;;  %p2983_p1 = scmp.lt.s32.totalorder %s4015_s28, %s2981_s7 }
  0x2b   : > { %v422_v19 = vor.u32 %v420_v2, %v418_v10  ;;  %4098 = vst [vmem:[#allocation7_spill] sm:$0xff] %v3273_v23  ;;  %v3276_v24 = vld [vmem:[%s3157_s11 + $0x7c] sm:$0xf]  ;;  %v432_v25 = vshll.u32 %v3244_v7, 16  ;;  %v440_v27 = vshll.u32 %v3248_v8, 16  ;;  %v428_v33 = vshrl.u32 %v3211_v54, 16 }
  0x2c   : > { %4099 = vst [vmem:[#allocation8_spill] sm:$0xff] %v3276_v24  ;;  %v3286_v29 = vld [vmem:[%s3157_s11 + $0x70] sm:$0xf]  ;;  %v3289_v32 = vld [vmem:[%s3157_s11 + $0x74] sm:$0xf]  ;;  %v448_v34 = vshll.u32 %v3253_v11, 16  ;;  %v3299_v39 = vcombine.low %v3266_v16, %v3269_v17  ;;  %v3303_v41 = vcombine.low %v3273_v23, %v3276_v24  ;;  %v419_v43 = vsel %vm367_vm2, %v414_v18, %v418_v10 }
  0x2d   : > { %4100 = vst [vmem:[#allocation9_spill] sm:$0xff] %v3289_v32  ;;  %v436_v37 = vshrl.u32 %v3244_v7, 16  ;;  %v456_v38 = vshll.u32 %v3263_v15, 16  ;;  %v3306_v42 = vld [vmem:[%s3157_s11 + $0x80] sm:$0xf]  ;;  %v427_v44 = vsel %vm367_vm2, %v422_v19, %v426_v22  ;;  %v444_v47 = vshrl.u32 %v3248_v8, 16 }
  0x2e   : > { %4101 = vst [vmem:[#allocation10_spill] sm:$0xff] %v3303_v41  ;;  %4102 = vst [vmem:[#allocation11_spill] sm:$0xff] %v3306_v42  ;;  %v3316_v48 = vcombine.low %v3286_v29, %v3289_v32  ;;  %v3319_v49 = vld [vmem:[%s3157_s11 + $0x88] sm:$0xf]  ;;  %v434_v51 = vrot.slane %v432_v25, 1  ;;  %v442_v52 = vrot.slane %v440_v27, 1  ;;  %v430_v2 = vor.u32 %v428_v33, %v426_v22 }
  0x2f   : > { %2671 = vmatmul.mubr.msk.bf16.gmra.mrb[4].mxu0 %vm564_vm1, %v403_v6  ;;  %4104 = vst [vmem:[#allocation13_spill] sm:$0xff] %v3319_v49  ;;  %v452_v53 = vshrl.u32 %v3253_v11, 16  ;;  %v472_v55 = vshll.u32 %v3283_v28, 16  ;;  %v450_v58 = vrot.slane %v448_v34, 1  ;;  %v460_v59 = vshrl.u32 %v3263_v15, 16  ;;  %s2982_s8 = scalar_lea.vmem %s2981_s7, 4096 }
  0x30   : > { %2674 = vmatprep.mubr.msk.bf16.mxu0 %vm564_vm1, %v411_v9  ;;  %v488_v60 = vshll.u32 %v3303_v41, 16  ;;  %v458_v3 = vrot.slane %v456_v38, 1  ;;  %v464_v6 = vshll.u32 %v3299_v39, 16  ;;  %v3338_v10 = vld [vmem:[%s3157_s11 + $0x90] sm:$0xf]  ;;  %v468_v19 = vshrl.u32 %v3299_v39, 16  ;;  %p2984_p2 = scmp.lt.s32.totalorder %s2982_s8, %s2976_s5 }
  0x31   : > { %2725 = vmatmul.mubr.msk.bf16.gmra.mrb[8].mxu1 %vm564_vm1, %v2350_v40  ;;  %v3309_v40 = vld [vmem:[%s3157_s11 + $0x84] sm:$0xf]  ;;  %4107 = vst [vmem:[#allocation16_spill] sm:$0xff] %v3338_v10  ;;  %v3341_v18 = vld [vmem:[%s3157_s11 + $0x94] sm:$0xf]  ;;  %v480_v25 = vshll.u32 %v3316_v48, 16  ;;  %v438_v22 = vor.u32 %v436_v37, %v434_v51  ;;  %v435_v37 = vsel %vm367_vm2, %v430_v2, %v434_v51  ;;  %v446_v24 = vor.u32 %v444_v47, %v442_v52 }
  0x32   : > { %2728 = vmatprep.mubr.msk.bf16.mxu1 %vm564_vm1, %v2351_v50  ;;  %4103 = vst [vmem:[#allocation12_spill] sm:$0xff] %v3309_v40  ;;  %v3322_v50 = vld [vmem:[%s3157_s11 + $0x8c] sm:$0xf]  ;;  %v3330_v63 = vcombine.low %v3306_v42, %v3309_v40  ;;  %4108 = vst [vmem:[#allocation17_spill] sm:$0xff] %v3341_v18  ;;  %v474_v27 = vrot.slane %v472_v55, 1  ;;  %v476_v33 = vshrl.u32 %v3283_v28, 16  ;;  %v462_v42 = vor.u32 %v460_v59, %v458_v3  ;;  %p2985_p3 = por %p2984_p2, %p2983_p1 }
  0x33   : > { %4105 = vst [vmem:[#allocation14_spill] sm:$0xff] %v3322_v50  ;;  %v3335_v9 = vcombine.low %v3319_v49, %v3322_v50  ;;  %v3349_v34 = vld [vmem:[%s3157_s11 + $0x98] sm:$0xf]  ;;  %v484_v38 = vshrl.u32 %v3316_v48, 16  ;;  %v492_v50 = vshrl.u32 %v3303_v41, 16  ;;  %v482_v41 = vrot.slane %v480_v25, 1 }
  0x34   : > { %v496_v40 = vshll.u32 %v3330_v63, 16  ;;  %v3357_v49 = vld [vmem:[%s3157_s11 + $0x9c] sm:$0xf]  ;;  %v3368_v32 = vld [vmem:[%s3157_s11 + $0xa0] sm:$0xf]  ;;  %v478_v51 = vor.u32 %v476_v33, %v474_v27  ;;  %v500_v2 = vshrl.u32 %v3330_v63, 16  ;;  %p2986_p5 = pnand %p2985_p3, %p2979_p0 }
  0x35   : > { %4106 = vst [vmem:[#allocation15_spill] sm:$0xff] %v3335_v9  ;;  %v504_v55 = vshll.u32 %v3335_v9, 16  ;;  %v3371_v23 = vld [vmem:[%s3157_s11 + $0xa4] sm:$0xf]  ;;  %v508_v25 = vshrl.u32 %v3335_v9, 16 }
  0x36   : > { %v3396_v33 = vsel %vm367_vm2, %v478_v51, %v482_v41  ;;  %v3403_v9 = vld [vmem:[%s3157_s11 + $0xc0] sm:$0xf]  ;;  %v1467_v51 = vshll.u32 %v3174_v21, 16 }
  0x37   : > { %2675 = vmatmul.mubr.msk.bf16.gmra.mrb[8].mxu0 %vm564_vm1, %v419_v43  ;;  %v490_v43 = vrot.slane %v488_v60, 1  ;;  %v454_v60 = vor.u32 %v452_v53, %v450_v58  ;;  %v498_v53 = vrot.slane %v496_v40, 1  ;;  %v506_v59 = vrot.slane %v504_v55, 1 }
  0x38   : > { %2678 = vmatprep.mubr.msk.bf16.mxu0 %vm564_vm1, %v427_v44  ;;  %v466_v44 = vrot.slane %v464_v6, 1  ;;  %v443_v6 = vsel %vm367_vm2, %v438_v22, %v442_v52  ;;  %v451_v52 = vsel %vm367_vm2, %v446_v24, %v450_v58  ;;  %v3418_v58 = vld [vmem:[%s3157_s11 + $0xac] sm:$0xf] }
  0x39   : > { %2729 = vmatmul.mubr.msk.bf16.gmra.mrb[12].mxu1 %vm564_vm1, %v3211_v54  ;;  %v3365_v54 = vcombine.low %v3338_v10, %v3341_v18  ;;  %v486_v18 = vor.u32 %v484_v38, %v482_v41  ;;  %v494_v47 = vor.u32 %v492_v50, %v490_v43  ;;  %v459_v22 = vsel %vm367_vm2, %v454_v60, %v458_v3  ;;  %v3415_v41 = vld [vmem:[%s3157_s11 + $0xa8] sm:$0xf] }
  0x3a   : > { %2732 = vmatprep.mubr.msk.bf16.mxu1 %vm564_vm1, %v3244_v7  ;;  %v470_v13 = vor.u32 %v468_v19, %v466_v44  ;;  %v3376_v7 = vcombine.low %v3349_v34, %v3357_v49  ;;  %v3383_v19 = vcombine.low %v3368_v32, %v3371_v23  ;;  %v3389_v50 = vsel %vm367_vm2, %v462_v42, %v466_v44 }
  0x3b   : > { %v512_v10 = vshll.u32 %v3365_v54, 16  ;;  %v502_v38 = vor.u32 %v500_v2, %v498_v53  ;;  %v3408_v24 = vsel %vm367_vm2, %v486_v18, %v490_v43  ;;  %v3411_v42 = vsel %vm367_vm2, %v494_v47, %v498_v53 }
  0x3c   : > { %v3393_v40 = vsel %vm367_vm2, %v470_v13, %v474_v27  ;;  %v520_v55 = vshll.u32 %v3376_v7, 16  ;;  %v516_v13 = vshrl.u32 %v3365_v54, 16  ;;  %v1461_v44 = vshrl.u32 %v3165_v14, 16 }
  0x3d   : > { %v3428_v18 = vrot.slane %v512_v10, 1  ;;  %v1463_v60 = vshll.u32 %v3165_v14, 16  ;;  %v1471_v2 = vshrl.u32 %v3174_v21, 16  ;;  %v3443_v10 = vcombine.low %v3415_v41, %v3418_v58 }
  0x3e   : > { %v1474_v47 = vshll.u32 %v3182_v30, 16  ;;  %v3448_v27 = vcombine.low %v3172_v20, %v3178_v26  ;;  %v1478_v43 = vshrl.u32 %v3182_v30, 16 }
  0x3f   : > { %2679 = vmatmul.mubr.msk.bf16.gmra.mrb[12].mxu0 %vm564_vm1, %v435_v37  ;;  %v3400_v37 = vld [vmem:[%s3157_s11 + $0xbc] sm:$0xf]  ;;  %v1465_v53 = vrot.slane %v1463_v60, 1  ;;  %v3452_v21 = vor.u32 %v516_v13, %v3428_v18 }
  0x40   : > { %2682 = vmatprep.mubr.msk.bf16.mxu0 %vm564_vm1, %v443_v6  ;;  %v3422_v3 = vcombine.low %v3400_v37, %v3403_v9  ;;  %v3437_v6 = vsel %vm367_vm2, %v502_v38, %v506_v59  ;;  %v3456_v38 = vcombine.low %v3185_v31, %v3188_v35  ;;  %v1481_v20 = vshll.u32 %v3448_v27, 16 }
  0x41   : > { %2733 = vmatmul.mubr.msk.bf16.gmra.mrb[16].mxu1 %vm564_vm1, %v3248_v8  ;;  %v3426_v8 = vor.u32 %v508_v25, %v506_v59  ;;  %v1469_v25 = vrot.slane %v1467_v51, 1  ;;  %v1476_v59 = vrot.slane %v1474_v47, 1  ;;  %v1466_v60 = vor.u32 %v1465_v53, %v1461_v44 }
  0x42   : > { %4109 = vst [vmem:[#allocation18_spill] sm:$0xff] %v3422_v3  ;;  %2736 = vmatprep.mubr.msk.bf16.mxu1 %vm564_vm1, %v3253_v11  ;;  %v3439_v11 = vrot.slane %v520_v55, 1  ;;  %v3460_v55 = vcombine.low %v3191_v36, %v3198_v45  ;;  %v1485_v26 = vshrl.u32 %v3448_v27, 16  ;;  %v1488_v47 = vshll.u32 %v3456_v38, 16 }
  0x43   : > { %v1473_v51 = vor.u32 %v1471_v2, %v1469_v25  ;;  %v1480_v13 = vor.u32 %v1478_v43, %v1476_v59  ;;  %v1492_v31 = vshrl.u32 %v3456_v38, 16  ;;  %v3472_v36 = vsel %vm367_vm2, %v1466_v60, %v1469_v25 }
  0x44   : > { %v1495_v35 = vshll.u32 %v3460_v55, 16  ;;  %v1490_v43 = vrot.slane %v1488_v47, 1  ;;  %v1499_v2 = vshrl.u32 %v3460_v55, 16 }
  0x45   : > { %v3475_v45 = vsel %vm367_vm2, %v1473_v51, %v1476_v59  ;;  %v3496_v51 = vcombine.low %v3225_v62, %v3229_v0 }
  0x46   : > { %v1497_v44 = vrot.slane %v1495_v35, 1 }
  0x47   : > { %2683 = vmatmul.mubr.msk.bf16.gmra.mrb[16].mxu0 %vm564_vm1, %v451_v52  ;;  %v1483_v52 = vrot.slane %v1481_v20, 1  ;;  %v1520_v35 = vshrl.u32 %v3496_v51, 16 }
  0x48   : > { %2686 = vmatprep.mubr.msk.bf16.mxu0 %vm564_vm1, %v459_v22  ;;  %v3479_v22 = vcombine.low %v3201_v46, %v3215_v56  ;;  %v1494_v56 = vor.u32 %v1492_v31, %v1490_v43  ;;  %v1501_v60 = vor.u32 %v1499_v2, %v1497_v44  ;;  %v1516_v31 = vshll.u32 %v3496_v51, 16 }
  0x49   : > { %2737 = vmatmul.mubr.msk.bf16.gmra.mrb[20].mxu1 %vm564_vm1, %v3263_v15  ;;  %v3486_v15 = vcombine.low %v3218_v57, %v3222_v61  ;;  %v3489_v53 = vsel %vm367_vm2, %v1480_v13, %v1483_v52  ;;  %v1487_v25 = vor.u32 %v1485_v26, %v1483_v52  ;;  %v3504_v26 = vcombine.low %v3232_v1, %v3236_v4 }
  0x4a   : > { %2740 = vmatprep.mubr.msk.bf16.mxu1 %vm564_vm1, %v3299_v39  ;;  %v1502_v59 = vshll.u32 %v3479_v22, 16  ;;  %v1506_v46 = vshrl.u32 %v3479_v22, 16  ;;  %v3507_v13 = vsel %vm367_vm2, %v1494_v56, %v1497_v44  ;;  %v3519_v1 = vcombine.low %v3239_v5, %v3266_v16 }
  0x4b   : > { %v1509_v39 = vshll.u32 %v3486_v15, 16  ;;  %v3499_v20 = vsel %vm367_vm2, %v1487_v25, %v1490_v43  ;;  %v1513_v61 = vshrl.u32 %v3486_v15, 16  ;;  %v1523_v52 = vshll.u32 %v3504_v26, 16 }
  0x4c   : > { %v1504_v57 = vrot.slane %v1502_v59, 1  ;;  %v1518_v43 = vrot.slane %v1516_v31, 1  ;;  %v1527_v44 = vshrl.u32 %v3504_v26, 16  ;;  %v1530_v5 = vshll.u32 %v3519_v1, 16 }
  0x4d   : > { %v1511_v47 = vrot.slane %v1509_v39, 1  ;;  %v1525_v25 = vrot.slane %v1523_v52, 1  ;;  %v1534_v16 = vshrl.u32 %v3519_v1, 16  ;;  %v4111_v39 = vld [vmem:[#allocation7_spill] sm:$0xff] }
  0x4e   : > { %v3514_v62 = vsel %vm367_vm2, %v1501_v60, %v1504_v57  ;;  %v1508_v0 = vor.u32 %v1506_v46, %v1504_v57  ;;  %v1522_v59 = vor.u32 %v1520_v35, %v1518_v43  ;;  %v1532_v56 = vrot.slane %v1530_v5, 1  ;;  %v4112_v57 = vld [vmem:[#allocation9_spill] sm:$0xff] }
  0x4f   : > { %2687 = vmatmul.mubr.msk.bf16.gmra.mrb[20].mxu0 %vm564_vm1, %v3389_v50  ;;  %v1515_v4 = vor.u32 %v1513_v61, %v1511_v47  ;;  %v3526_v50 = vcombine.low %v3269_v17, %v3256_v12  ;;  %v4110_v17 = vld [vmem:[#allocation6_spill] sm:$0xff]  ;;  %v1529_v46 = vor.u32 %v1527_v44, %v1525_v25  ;;  %v3548_v61 = vcombine.low %v4112_v57, %v4111_v39 }
  0x50   : > { %2690 = vmatprep.mubr.msk.bf16.mxu0 %vm564_vm1, %v3393_v40  ;;  %v3531_v2 = vsel %vm367_vm2, %v1508_v0, %v1511_v47 }
  0x51   : > { %2741 = vmatmul.mubr.msk.bf16.gmra.mrb[24].mxu1 %vm564_vm1, %v3283_v28  ;;  %v3538_v40 = vsel %vm367_vm2, %v1515_v4, %v1518_v43  ;;  %v1537_v12 = vshll.u32 %v3526_v50, 16  ;;  %v3543_v28 = vcombine.low %v4110_v17, %v3286_v29  ;;  %v1541_v60 = vshrl.u32 %v3526_v50, 16  ;;  %v4113_v4 = vld [vmem:[#allocation11_spill] sm:$0xff]  ;;  %v4114_v43 = vld [vmem:[#allocation8_spill] sm:$0xff] }
  0x52   : > { %2744 = vmatprep.mubr.msk.bf16.mxu1 %vm564_vm1, %v3316_v48  ;;  %v3551_v48 = vsel %vm367_vm2, %v1522_v59, %v1525_v25  ;;  %v3556_v0 = vsel %vm367_vm2, %v1529_v46, %v1532_v56  ;;  %v1536_v29 = vor.u32 %v1534_v16, %v1532_v56  ;;  %v1551_v52 = vshll.u32 %v3548_v61, 16  ;;  %v4116_v59 = vld [vmem:[#allocation13_spill] sm:$0xff] }
  0x53   : > { %v1539_v47 = vrot.slane %v1537_v12, 1  ;;  %v1544_v31 = vshll.u32 %v3543_v28, 16  ;;  %v1548_v35 = vshrl.u32 %v3543_v28, 16  ;;  %v3561_v44 = vcombine.low %v4114_v43, %v4113_v4  ;;  %v4117_v12 = vld [vmem:[#allocation12_spill] sm:$0xff] }
  0x54   : > { %v1555_v25 = vshrl.u32 %v3548_v61, 16  ;;  %v3566_v39 = vcombine.low %v4117_v12, %v4116_v59  ;;  %v1553_v16 = vrot.slane %v1551_v52, 1  ;;  %v4118_v43 = vld [vmem:[#allocation16_spill] sm:$0xff]  ;;  %v4119_v59 = vld [vmem:[#allocation14_spill] sm:$0xff] }
  0x55   : > { %4115 = vst [vmem:[#allocation6_spill] sm:$0xff] %v3561_v44  ;;  %v1543_v5 = vor.u32 %v1541_v60, %v1539_v47  ;;  %v1546_v17 = vrot.slane %v1544_v31, 1  ;;  %v3571_v46 = vsel %vm367_vm2, %v1536_v29, %v1539_v47  ;;  %v1558_v56 = vshll.u32 %v3561_v44, 16  ;;  %v4121_v47 = vld [vmem:[#allocation10_spill] sm:$0xff] }
  0x56   : > { %v1562_v57 = vshrl.u32 %v3561_v44, 16  ;;  %v1565_v4 = vshll.u32 %v3566_v39, 16  ;;  %v1557_v29 = vor.u32 %v1555_v25, %v1553_v16  ;;  %v1569_v12 = vshrl.u32 %v3566_v39, 16 }
  0x57   : > { %2691 = vmatmul.mubr.msk.bf16.gmra.mrb[24].mxu0 %vm564_vm1, %v3396_v33  ;;  %v3578_v60 = vsel %vm367_vm2, %v1543_v5, %v1546_v17  ;;  %v1550_v31 = vor.u32 %v1548_v35, %v1546_v17  ;;  %v3583_v33 = vcombine.low %v4119_v59, %v4118_v43  ;;  %v1560_v52 = vrot.slane %v1558_v56, 1 }
  0x58   : > { %2694 = vmatprep.mubr.msk.bf16.mxu0 %vm564_vm1, %v3408_v24  ;;  %v4122_v24 = vld [vmem:[#allocation17_spill] sm:$0xff]  ;;  %v1567_v5 = vrot.slane %v1565_v4, 1  ;;  %v3605_v59 = vcombine.low %v3357_v49, %v3368_v32  ;;  %v3610_v4 = vcombine.low %v3371_v23, %v3415_v41  ;;  %v235_v49 = vld [vmem:[%s3157_s11 + $0xb8] sm:$0xf] }
  0x59   : > { %4120 = vst [vmem:[#allocation7_spill] sm:$0xff] %v3583_v33  ;;  %2745 = vmatmul.mubr.msk.bf16.gmra.mrb[28].mxu1 %vm564_vm1, %v4121_v47  ;;  %v3590_v44 = vcombine.low %v4122_v24, %v3349_v34  ;;  %v3595_v35 = vsel %vm367_vm2, %v1550_v31, %v1553_v16  ;;  %v1572_v17 = vshll.u32 %v3583_v33, 16  ;;  %v1576_v25 = vshrl.u32 %v3583_v33, 16  ;;  %v233_v47 = vld [vmem:[%s3157_s11 + $0xb0] sm:$0xf] }
  0x5a   : > { %2748 = vmatprep.mubr.msk.bf16.mxu1 %vm564_vm1, %v3330_v63  ;;  %v3600_v56 = vsel %vm367_vm2, %v1557_v29, %v1560_v52  ;;  %v1564_v43 = vor.u32 %v1562_v57, %v1560_v52  ;;  %4124 = vst [vmem:[#allocation11_spill] sm:$0xff] %v3605_v59  ;;  %v1571_v63 = vor.u32 %v1569_v12, %v1567_v5  ;;  %4125 = vst [vmem:[#allocation8_spill] sm:$0xff] %v3610_v4  ;;  %v234_v32 = vld [vmem:[%s3157_s11 + $0xb4] sm:$0xf] }
  0x5b   : > { %4123 = vst [vmem:[#allocation9_spill] sm:$0xff] %v3590_v44  ;;  %v1579_v34 = vshll.u32 %v3590_v44, 16  ;;  %v1574_v16 = vrot.slane %v1572_v17, 1  ;;  %v1583_v31 = vshrl.u32 %v3590_v44, 16  ;;  %v1586_v52 = vshll.u32 %v3605_v59, 16 }
  0x5c   : > { %v3614_v29 = vsel %vm367_vm2, %v1564_v43, %v1567_v5  ;;  %v1590_v24 = vshrl.u32 %v3605_v59, 16  ;;  %v1593_v44 = vshll.u32 %v3610_v4, 16  ;;  %v3625_v23 = vcombine.low %v3418_v58, %v233_v47  ;;  %v3633_v59 = vld [vmem:[%s3157_s11 + $0xc4] sm:$0xff]  }
  0x5d   : > { %v1581_v57 = vrot.slane %v1579_v34, 1  ;;  %v3621_v12 = vsel %vm367_vm2, %v1571_v63, %v1574_v16  ;;  %v1578_v17 = vor.u32 %v1576_v25, %v1574_v16  ;;  %v1588_v5 = vrot.slane %v1586_v52, 1  ;;  %4128 = vst [vmem:[#allocation16_spill] sm:$0xff] %v3633_v59 }
  0x5e   : > { %4126 = vst [vmem:[#allocation13_spill] sm:$0xff] %v3625_v23  ;;  %v1597_v43 = vshrl.u32 %v3610_v4, 16  ;;  %v3630_v34 = vcombine.low %v234_v32, %v235_v49  ;;  %v1595_v63 = vrot.slane %v1593_v44, 1  ;;  %v1600_v58 = vshll.u32 %v3625_v23, 16 }
  0x5f   : > { %2695 = vmatmul.mubr.msk.bf16.gmra.mrb[28].mxu0 %vm564_vm1, %v3411_v42  ;;  %v1585_v41 = vor.u32 %v1583_v31, %v1581_v57  ;;  %v3638_v25 = vsel %vm367_vm2, %v1578_v17, %v1581_v57  ;;  %v1604_v16 = vshrl.u32 %v3625_v23, 16  ;;  %v4129_v42 = vld [vmem:[#allocation15_spill] sm:$0xff]  ;;  %v1592_v52 = vor.u32 %v1590_v24, %v1588_v5 }
  0x60   : > { %4127 = vst [vmem:[#allocation12_spill] sm:$0xff] %v3630_v34  ;;  %2698 = vmatprep.mubr.msk.bf16.mxu0 %vm564_vm1, %v3437_v6  ;;  %v1607_v4 = vshll.u32 %v3630_v34, 16  ;;  %v1611_v33 = vshrl.u32 %v3630_v34, 16  ;;  %v1599_v6 = vor.u32 %v1597_v43, %v1595_v63  ;;  %v1602_v44 = vrot.slane %v1600_v58, 1 }
  0x61   : > { %2749 = vmatmul.mubr.msk.bf16.gmra.mrb[32].mxu1 %vm564_vm1, %v4129_v42  ;;  %v3645_v31 = vsel %vm367_vm2, %v1585_v41, %v1588_v5  ;;  %v1614_v57 = vshll.u32 %v3422_v3, 16  ;;  %v1618_v17 = vshrl.u32 %v3422_v3, 16  ;;  %v532_v23 = vshrl.u32 %v3383_v19, 16 }
  0x62   : > { %2752 = vmatprep.mubr.msk.bf16.mxu1 %vm564_vm1, %v3365_v54  ;;  %v3655_v42 = vsel %vm367_vm2, %v1592_v52, %v1595_v63  ;;  %v1609_v41 = vrot.slane %v1607_v4, 1  ;;  %v1621_v24 = vshll.u32 %v3633_v59, 16  ;;  %v515_v5 = vsel %vm367_vm2, %v3426_v8, %v3428_v18 }
  0x63   : > { %v3662_v54 = vsel %vm367_vm2, %v1599_v6, %v1602_v44  ;;  %v1606_v43 = vor.u32 %v1604_v16, %v1602_v44  ;;  %v1616_v58 = vrot.slane %v1614_v57, 1  ;;  %v523_v3 = vsel %vm367_vm2, %v3452_v21, %v3439_v11 }
  0x64   : > { %v536_v34 = vshll.u32 %v3443_v10, 16  ;;  %v1613_v63 = vor.u32 %v1611_v33, %v1609_v41  ;;  %v3668_v52 = vrot.slane %v1621_v24, 1  ;;  %v4130_v8 = vshll.u32 %v3383_v19, 16 }
  0x65   : > { %v3671_v4 = vsel %vm367_vm2, %v1606_v43, %v1609_v41  ;;  %v1620_v59 = vor.u32 %v1618_v17, %v1616_v58  ;;  %v2367_v16 = vcombine.low %v233_v47, %v234_v32  ;;  %v4131_v21 = vshrl.u32 %v3376_v7, 16 }
  0x66   : > { %v530_v18 = vrot.slane %v4130_v8, 1  ;;  %v3677_v6 = vsel %vm367_vm2, %v1613_v63, %v1616_v58  ;;  %v538_v17 = vrot.slane %v536_v34, 1  ;;  %v2368_v47 = vcombine.low %v235_v49, %v3400_v37 }
  0x67   : > { %2699 = vmatmul.mubr.msk.bf16.gmra.mrb[32].mxu0 %vm564_vm1, %v515_v5  ;;  %v526_v33 = vor.u32 %v4131_v21, %v3439_v11  ;;  %v3685_v44 = vsel %vm367_vm2, %v1620_v59, %v3668_v52  ;;  %v544_v32 = vshll.u32 %v2367_v16, 16  ;;  %v540_v41 = vshrl.u32 %v3443_v10, 16 }
  0x68   : > { %2702 = vmatprep.mubr.msk.bf16.mxu0 %vm564_vm1, %v523_v3  ;;  %v534_v57 = vor.u32 %v532_v23, %v530_v18  ;;  %v548_v24 = vshrl.u32 %v2367_v16, 16  ;;  %v552_v59 = vshll.u32 %v2368_v47, 16  ;;  %v2369_v37 = vcombine.low %v3403_v9, %v3403_v9 }
  0x69   : > { %2753 = vmatmul.mubr.msk.bf16.gmra.mrb[36].mxu1 %vm564_vm1, %v3376_v7  ;;  %v531_v3 = vsel %vm367_vm2, %v526_v33, %v530_v18  ;;  %v546_v5 = vrot.slane %v544_v32, 1  ;;  %v542_v7 = vor.u32 %v540_v41, %v538_v17  ;;  %v556_v34 = vshrl.u32 %v2368_v47, 16 }
  0x6a   : > { %2756 = vmatprep.mubr.msk.bf16.mxu1 %vm564_vm1, %v3383_v19  ;;  %v539_v11 = vsel %vm367_vm2, %v534_v57, %v538_v17  ;;  %v554_v49 = vrot.slane %v552_v59, 1  ;;  %v560_v43 = vshll.u32 %v2369_v37, 16 }
  0x6b   : > { %v550_v19 = vor.u32 %v548_v24, %v546_v5  ;;  %v547_v23 = vsel %vm367_vm2, %v542_v7, %v546_v5 }
  0x6c   : > { %v558_v63 = vor.u32 %v556_v34, %v554_v49  ;;  %v562_v8 = vrot.slane %v560_v43, 1 }
  0x6d   : > { %v555_v58 = vsel %vm367_vm2, %v550_v19, %v554_v49 }
  0x6e   : > { %v563_v9 = vsel %vm367_vm2, %v558_v63, %v562_v8 }
  0x6f   : > { %2703 = vmatmul.mubr.msk.bf16.gmra.mrb[36].mxu0 %vm564_vm1, %v531_v3 }
  0x70   : > { %2706 = vmatprep.mubr.msk.bf16.mxu0 %vm564_vm1, %v539_v11 }
  0x71   : > { %2757 = vmatmul.mubr.msk.bf16.gmra.mrb[40].mxu1 %vm564_vm1, %v3443_v10  ;;  %v4132_v10 = vld [vmem:[#allocation5_spill] sm:$0xff] }
  0x72   : > { %2760 = vmatprep.mubr.msk.bf16.mxu1 %vm564_vm1, %v2367_v16 }
  0x77   : > { %2707 = vmatmul.mubr.msk.bf16.gmra.mrb[40].mxu0 %vm564_vm1, %v547_v23 }
  0x78   : > { %2710 = vmatprep.mubr.msk.bf16.mxu0 %vm564_vm1, %v555_v58 }
  0x79   : > { %2761 = vmatmul.mubr.msk.bf16.gmra.mrb[44].mxu1 %vm564_vm1, %v2368_v47 }
  0x7a   : > { %2816 = vmatprep.mubr.msk.bf16.mxu1 %vm564_vm1, %v3472_v36  ;;  %v4137_v36 = vld [vmem:[#allocation16_spill] sm:$0xff] }
  0x7f   : > { %2711 = vmatmul.mubr.msk.bf16.gmra.mrb[44].mxu0 %vm564_vm1, %v563_v9 }
  0x80   : > { %2766 = vmatprep.mubr.msk.bf16.mxu0 %vm564_vm1, %v3165_v14  ;;  %v4133_v14 = vld [vmem:[#allocation6_spill] sm:$0xff] }
  0x81   : > { %2817 = vmatmul.mubr.msk.bf16.vlgmr.msra.gmra.mrb[48].mxu1 %vm564_vm1, %v3475_v45  ;;  %v1625_v45 = vshrl.u32 %v4137_v36, 16 }
  0x82   : > { %2820 = vmatprep.mubr.msk.bf16.mxu1 %vm564_vm1, %v3489_v53  ;;  %v4139_v53 = vld [vmem:[#allocation13_spill] sm:$0xff] }
  0x87   : > { %2767 = vmatmul.mubr.msk.bf16.vlgmr.msra.gmra.mrb[48].mxu0 %vm564_vm1, %v4132_v10 }
  0x88   : > { %2770 = vmatprep.mubr.msk.bf16.mxu0 %vm564_vm1, %v3182_v30  ;;  %v4134_v30 = vld [vmem:[#allocation7_spill] sm:$0xff] }
  0x89   : > { %2821 = vmatmul.mubr.msk.bf16.gmra.mrb[52].mxu1 %vm564_vm1, %v3499_v20 }
  0x8a   : > { %2824 = vmatprep.mubr.msk.bf16.mxu1 %vm564_vm1, %v3507_v13  ;;  %v4140_v13 = vld [vmem:[#allocation12_spill] sm:$0xff] }
  0x8f   : > { %2771 = vmatmul.mubr.msk.bf16.gmra.mrb[52].mxu0 %vm564_vm1, %v3448_v27  ;;  %v4135_v27 = vld [vmem:[#allocation9_spill] sm:$0xff] }
  0x90   : > { %2774 = vmatprep.mubr.msk.bf16.mxu0 %vm564_vm1, %v3456_v38  ;;  %v4136_v38 = vld [vmem:[#allocation11_spill] sm:$0xff] }
  0x91   : > { %2825 = vmatmul.mubr.msk.bf16.gmra.mrb[56].mxu1 %vm564_vm1, %v3514_v62  ;;  %v4141_v62 = vld [vmem:[#allocation18_spill] sm:$0xff] }
  0x92   : > { %2828 = vmatprep.mubr.msk.bf16.mxu1 %vm564_vm1, %v3531_v2 }
  0x97   : > { %2775 = vmatmul.mubr.msk.bf16.gmra.mrb[56].mxu0 %vm564_vm1, %v3460_v55  ;;  %v2975_v55 = vld [vmem:[%s3157_s11 + $0xcc] ss:$0 sps:$4 sm:$0xff]  }
  0x98   : > { %2778 = vmatprep.mubr.msk.bf16.mxu0 %vm564_vm1, %v3479_v22  ;;  %v1629_v22 = vshll.u32 %v2975_v55, 16 }
  0x99   : > { %2829 = vmatmul.mubr.msk.bf16.gmra.mrb[60].mxu1 %vm564_vm1, %v3538_v40 }
  0x9a   : > { %2832 = vmatprep.mubr.msk.bf16.mxu1 %vm564_vm1, %v3551_v48  ;;  %v1631_v20 = vrot.slane %v1629_v22, 1 }
  0x9f   : > { %2779 = vmatmul.mubr.msk.bf16.gmra.mrb[60].mxu0 %vm564_vm1, %v3486_v15  ;;  %v4138_v15 = vld [vmem:[#allocation8_spill] sm:$0xff] }
  0xa0   : > { %2782 = vmatprep.mubr.msk.bf16.mxu0 %vm564_vm1, %v3496_v51  ;;  %v1627_v51 = vor.u32 %v1625_v45, %v3668_v52 }
  0xa1   : > { %2833 = vmatmul.mubr.msk.bf16.gmra.mrb[64].mxu1 %vm564_vm1, %v3556_v0 }
  0xa2   : > { %2836 = vmatprep.mubr.msk.bf16.mxu1 %vm564_vm1, %v3571_v46 }
  0xa7   : > { %2783 = vmatmul.mubr.msk.bf16.gmra.mrb[64].mxu0 %vm564_vm1, %v3504_v26  ;;  %v1632_v26 = vsel %vm367_vm2, %v1627_v51, %v1631_v20 }
  0xa8   : > { %2786 = vmatprep.mubr.msk.bf16.mxu0 %vm564_vm1, %v3519_v1 }
  0xa9   : > { %2837 = vmatmul.mubr.msk.bf16.gmra.mrb[68].mxu1 %vm564_vm1, %v3578_v60 }
  0xaa   : > { %2840 = vmatprep.mubr.msk.bf16.mxu1 %vm564_vm1, %v3595_v35 }
  0xaf   : > { %2787 = vmatmul.mubr.msk.bf16.gmra.mrb[68].mxu0 %vm564_vm1, %v3526_v50 }
  0xb0   : > { %2790 = vmatprep.mubr.msk.bf16.mxu0 %vm564_vm1, %v3543_v28 }
  0xb1   : > { %2841 = vmatmul.mubr.msk.bf16.gmra.mrb[72].mxu1 %vm564_vm1, %v3600_v56 }
  0xb2   : > { %2844 = vmatprep.mubr.msk.bf16.mxu1 %vm564_vm1, %v3614_v29 }
  0xb7   : > { %2791 = vmatmul.mubr.msk.bf16.gmra.mrb[72].mxu0 %vm564_vm1, %v3548_v61 }
  0xb8   : > { %2794 = vmatprep.mubr.msk.bf16.mxu0 %vm564_vm1, %v4133_v14 }
  0xb9   : > { %2845 = vmatmul.mubr.msk.bf16.gmra.mrb[76].mxu1 %vm564_vm1, %v3621_v12 }
  0xba   : > { %2848 = vmatprep.mubr.msk.bf16.mxu1 %vm564_vm1, %v3638_v25 }
  0xbf   : > { %2795 = vmatmul.mubr.msk.bf16.gmra.mrb[76].mxu0 %vm564_vm1, %v3566_v39 }
  0xc0   : > { %2798 = vmatprep.mubr.msk.bf16.mxu0 %vm564_vm1, %v4134_v30 }
  0xc1   : > { %2849 = vmatmul.mubr.msk.bf16.gmra.mrb[80].mxu1 %vm564_vm1, %v3645_v31 }
  0xc2   : > { %2852 = vmatprep.mubr.msk.bf16.mxu1 %vm564_vm1, %v3655_v42 }
  0xc7   : > { %2799 = vmatmul.mubr.msk.bf16.gmra.mrb[80].mxu0 %vm564_vm1, %v4135_v27 }
  0xc8   : > { %2802 = vmatprep.mubr.msk.bf16.mxu0 %vm564_vm1, %v4136_v38 }
  0xc9   : > { %2853 = vmatmul.mubr.msk.bf16.gmra.mrb[84].mxu1 %vm564_vm1, %v3662_v54 }
  0xca   : > { %2856 = vmatprep.mubr.msk.bf16.mxu1 %vm564_vm1, %v3671_v4 }
  0xcf   : > { %2803 = vmatmul.mubr.msk.bf16.gmra.mrb[84].mxu0 %vm564_vm1, %v4138_v15 }
  0xd0   : > { %2806 = vmatprep.mubr.msk.bf16.mxu0 %vm564_vm1, %v4139_v53 }
  0xd1   : > { %2857 = vmatmul.mubr.msk.bf16.gmra.mrb[88].mxu1 %vm564_vm1, %v3677_v6 }
  0xd2   : > { %2860 = vmatprep.mubr.msk.bf16.mxu1 %vm564_vm1, %v3685_v44 }
  0xd7   : > { %2807 = vmatmul.mubr.msk.bf16.gmra.mrb[88].mxu0 %vm564_vm1, %v4140_v13 }
  0xd8   : > { %2810 = vmatprep.mubr.msk.bf16.mxu0 %vm564_vm1, %v4141_v62 }
  0xd9   : > { %2861 = vmatmul.mubr.msk.bf16.gmra.mrb[92].mxu1 %vm564_vm1, %v1632_v26 }
  0xdf   : > { %2811 = vmatmul.mubr.msk.bf16.gmra.mrb[92].mxu0 %vm564_vm1, %v4137_v36 }
  0xf3   : > { %v2718_v1 = vpop.f32.mrb[0].mxu1 }
  0xf4   : > { %v935_v50 = vpop.f32.mrb[1].mxu1 }
  0xf5   : > { %v2719_v2 = vpop.f32.mrb[2].mxu1 }
  0xf6   : > { %v938_v40 = vpop.f32.mrb[3].mxu1 }
  0xfa   : > { %v2668_v28 = vpop.f32.mrb[0].mxu0 }
  0xfb   : > { %v675_v61 = vpop.f32.mrb[1].mxu0 }
  0xfc   : > { %v3808_v48 = vadd.f32 %v935_v50, %v675_v61  ;;  %v2669_v0 = vpop.f32.mrb[2].mxu0  ;;  %v2722_v39 = vpop.f32.mrb[4].mxu1 }
  0xfd   : > { %v3810_v46 = vadd.f32 %v2719_v2, %v2669_v0  ;;  %v678_v60 = vpop.f32.mrb[3].mxu0  ;;  %v950_v35 = vpop.f32.mrb[5].mxu1 }
  0xfe   : > { %v3812_v56 = vadd.f32 %v938_v40, %v678_v60  ;;  %v2723_v29 = vpop.f32.mrb[6].mxu1 }
  0xff   : > { %v953_v12 = vpop.f32.mrb[7].mxu1 }
 0x102   : > { %v2672_v25 = vpop.f32.mrb[4].mxu0 }
 0x103   : > { %v3814_v31 = vadd.f32 %v2722_v39, %v2672_v25  ;;  %v690_v42 = vpop.f32.mrb[5].mxu0 }
 0x104   : > { %v3816_v54 = vadd.f32 %v950_v35, %v690_v42  ;;  %v2673_v52 = vpop.f32.mrb[6].mxu0  ;;  %v2726_v4 = vpop.f32.mrb[8].mxu1 }
 0x105   : > { %v3818_v18 = vadd.f32 %v2723_v29, %v2673_v52  ;;  %v693_v16 = vpop.f32.mrb[7].mxu0  ;;  %v965_v6 = vpop.f32.mrb[9].mxu1 }
 0x106   : > { %v2727_v21 = vpop.f32.mrb[10].mxu1 }
 0x107   : > { %v967_v33 = vpop.f32.mrb[11].mxu1 }
 0x10a   : > { %v2676_v44 = vpop.f32.mrb[8].mxu0 }
 0x10b   : > { %v3820_v57 = vadd.f32 %v2726_v4, %v2676_v44  ;;  %v705_v17 = vpop.f32.mrb[9].mxu0 }
 0x10c   : > { %v2677_v47 = vpop.f32.mrb[10].mxu0  ;;  %v2730_v32 = vpop.f32.mrb[12].mxu1 }
 0x10d   : > { %v707_v3 = vpop.f32.mrb[11].mxu0  ;;  %v979_v41 = vpop.f32.mrb[13].mxu1 }
 0x10e   : > { %v3822_v11 = vadd.f32 %v967_v33, %v707_v3  ;;  %v2731_v24 = vpop.f32.mrb[14].mxu1 }
 0x10f   : > { %v982_v59 = vpop.f32.mrb[15].mxu1 }
 0x112   : > { %v2680_v5 = vpop.f32.mrb[12].mxu0 }
 0x113   : > { %v719_v7 = vpop.f32.mrb[13].mxu0 }
 0x114   : > { %v3824_v37 = vadd.f32 %v979_v41, %v719_v7  ;;  %v2681_v19 = vpop.f32.mrb[14].mxu0  ;;  %v2734_v49 = vpop.f32.mrb[16].mxu1 }
 0x115   : > { %v3826_v23 = vadd.f32 %v2731_v24, %v2681_v19  ;;  %v722_v34 = vpop.f32.mrb[15].mxu0  ;;  %v994_v43 = vpop.f32.mrb[17].mxu1 }
 0x116   : > { %v3828_v58 = vadd.f32 %v982_v59, %v722_v34  ;;  %v2735_v63 = vpop.f32.mrb[18].mxu1 }
 0x117   : > { %v997_v8 = vpop.f32.mrb[19].mxu1 }
 0x11a   : > { %v2684_v9 = vpop.f32.mrb[16].mxu0 }
 0x11b   : > { %v3830_v10 = vadd.f32 %v2734_v49, %v2684_v9  ;;  %v734_v14 = vpop.f32.mrb[17].mxu0 }
 0x11c   : > { %v3832_v30 = vadd.f32 %v994_v43, %v734_v14  ;;  %v2685_v27 = vpop.f32.mrb[18].mxu0  ;;  %v2738_v38 = vpop.f32.mrb[20].mxu1 }
 0x11d   : > { %v3834_v55 = vadd.f32 %v2735_v63, %v2685_v27  ;;  %v737_v36 = vpop.f32.mrb[19].mxu0  ;;  %v1009_v45 = vpop.f32.mrb[21].mxu1 }
 0x11e   : > { %v2739_v22 = vpop.f32.mrb[22].mxu1 }
 0x11f   : > { %v1011_v15 = vpop.f32.mrb[23].mxu1 }
 0x122   : > { %v2688_v53 = vpop.f32.mrb[20].mxu0 }
 0x123   : > { %v3836_v51 = vadd.f32 %v2738_v38, %v2688_v53  ;;  %v749_v20 = vpop.f32.mrb[21].mxu0 }
 0x124   : > { %v2689_v26 = vpop.f32.mrb[22].mxu0  ;;  %v2742_v13 = vpop.f32.mrb[24].mxu1 }
 0x125   : > { %v751_v62 = vpop.f32.mrb[23].mxu0  ;;  %v1023_v1 = vpop.f32.mrb[25].mxu1 }
 0x126   : > { %v3838_v50 = vadd.f32 %v1011_v15, %v751_v62  ;;  %v2743_v2 = vpop.f32.mrb[26].mxu1 }
 0x127   : > { %v1026_v40 = vpop.f32.mrb[27].mxu1 }
 0x12a   : > { %v2692_v28 = vpop.f32.mrb[24].mxu0 }
 0x12b   : > { %v763_v61 = vpop.f32.mrb[25].mxu0 }
 0x12c   : > { %v3840_v0 = vadd.f32 %v1023_v1, %v763_v61  ;;  %v2693_v39 = vpop.f32.mrb[26].mxu0  ;;  %v2746_v60 = vpop.f32.mrb[28].mxu1 }
 0x12d   : > { %v3842_v35 = vadd.f32 %v2743_v2, %v2693_v39  ;;  %v766_v29 = vpop.f32.mrb[27].mxu0  ;;  %v1038_v12 = vpop.f32.mrb[29].mxu1 }
 0x12e   : > { %v3844_v25 = vadd.f32 %v1026_v40, %v766_v29  ;;  %v2747_v42 = vpop.f32.mrb[30].mxu1 }
 0x12f   : > { %v1041_v52 = vpop.f32.mrb[31].mxu1 }
 0x132   : > { %v2696_v4 = vpop.f32.mrb[28].mxu0 }
 0x133   : > { %v3846_v16 = vadd.f32 %v2746_v60, %v2696_v4  ;;  %v778_v6 = vpop.f32.mrb[29].mxu0 }
 0x134   : > { %v3848_v21 = vadd.f32 %v1038_v12, %v778_v6  ;;  %v2697_v33 = vpop.f32.mrb[30].mxu0  ;;  %v2750_v44 = vpop.f32.mrb[32].mxu1 }
 0x135   : > { %v3850_v17 = vadd.f32 %v2747_v42, %v2697_v33  ;;  %v781_v47 = vpop.f32.mrb[31].mxu0  ;;  %v1053_v32 = vpop.f32.mrb[33].mxu1 }
 0x136   : > { %v2751_v3 = vpop.f32.mrb[34].mxu1 }
 0x137   : > { %v1055_v41 = vpop.f32.mrb[35].mxu1 }
 0x13a   : > { %v2700_v24 = vpop.f32.mrb[32].mxu0 }
 0x13b   : > { %v3852_v59 = vadd.f32 %v2750_v44, %v2700_v24  ;;  %v793_v5 = vpop.f32.mrb[33].mxu0 }
 0x13c   : > { %v2701_v7 = vpop.f32.mrb[34].mxu0  ;;  %v2754_v19 = vpop.f32.mrb[36].mxu1 }
 0x13d   : > { %v795_v49 = vpop.f32.mrb[35].mxu0  ;;  %v1067_v34 = vpop.f32.mrb[37].mxu1 }
 0x13e   : > { %v3854_v43 = vadd.f32 %v1055_v41, %v795_v49  ;;  %v2755_v63 = vpop.f32.mrb[38].mxu1 }
 0x13f   : > { %v1070_v8 = vpop.f32.mrb[39].mxu1 }
 0x142   : > { %v2704_v9 = vpop.f32.mrb[36].mxu0 }
 0x143   : > { %v807_v14 = vpop.f32.mrb[37].mxu0 }
 0x144   : > { %v3856_v27 = vadd.f32 %v1067_v34, %v807_v14  ;;  %v2705_v38 = vpop.f32.mrb[38].mxu0  ;;  %v2758_v36 = vpop.f32.mrb[40].mxu1  ;;  %v3876_v34 = vld [vmem:[%s4069_s2] ss:$0 sm:$0xff] }
 0x145   : > { %v3858_v45 = vadd.f32 %v2755_v63, %v2705_v38  ;;  %v810_v22 = vpop.f32.mrb[39].mxu0  ;;  %v1082_v15 = vpop.f32.mrb[41].mxu1 }
 0x146   : > { %v3860_v53 = vadd.f32 %v1070_v8, %v810_v22  ;;  %v2759_v20 = vpop.f32.mrb[42].mxu1 }
 0x147   : > { %v1085_v26 = vpop.f32.mrb[43].mxu1 }
 0x14a   : > { %v2708_v13 = vpop.f32.mrb[40].mxu0 }
 0x14b   : > { %v3862_v62 = vadd.f32 %v2758_v36, %v2708_v13  ;;  %v822_v1 = vpop.f32.mrb[41].mxu0 }
 0x14c   : > { %v3864_v2 = vadd.f32 %v1082_v15, %v822_v1  ;;  %v2709_v40 = vpop.f32.mrb[42].mxu0  ;;  %v2762_v28 = vpop.f32.mrb[44].mxu1 }
 0x14d   : > { %v3866_v61 = vadd.f32 %v2759_v20, %v2709_v40  ;;  %v825_v39 = vpop.f32.mrb[43].mxu0  ;;  %v1097_v60 = vpop.f32.mrb[45].mxu1 }
 0x14e   : > { %v2763_v29 = vpop.f32.mrb[46].mxu1 }
 0x14f   : > { %v1099_v12 = vpop.f32.mrb[47].mxu1 }
 0x152   : > { %v2712_v42 = vpop.f32.mrb[44].mxu0 }
 0x153   : > { %v3868_v52 = vadd.f32 %v2762_v28, %v2712_v42  ;;  %v837_v4 = vpop.f32.mrb[45].mxu0 }
 0x154   : > { %v2713_v6 = vpop.f32.mrb[46].mxu0  ;;  %v2818_v33 = vpop.f32.mrb[48].mxu1 }
 0x155   : > { %v839_v44 = vpop.f32.mrb[47].mxu0  ;;  %v1742_v47 = vpop.f32.mrb[49].mxu1 }
 0x156   : > { %v3870_v32 = vadd.f32 %v1099_v12, %v839_v44  ;;  %v2819_v3 = vpop.f32.mrb[50].mxu1 }
 0x157   : > { %v1745_v41 = vpop.f32.mrb[51].mxu1 }
 0x15a   : > { %v2768_v24 = vpop.f32.mrb[48].mxu0 }
 0x15b   : > { %v1249_v5 = vpop.f32.mrb[49].mxu0 }
 0x15c   : > { %v1424_v7 = vadd.f32 %v1249_v5, %v3808_v48  ;;  %v2769_v19 = vpop.f32.mrb[50].mxu0  ;;  %v2822_v49 = vpop.f32.mrb[52].mxu1 }
 0x15d   : > { %v1426_v63 = vadd.f32 %v2769_v19, %v3810_v46  ;;  %v1252_v8 = vpop.f32.mrb[51].mxu0  ;;  %v1757_v9 = vpop.f32.mrb[53].mxu1 }
 0x15e   : > { %v1917_v14 = vadd.f32 %v1742_v47, %v1424_v7  ;;  %v1425_v38 = vadd.f32 %v1252_v8, %v3812_v56  ;;  %v2823_v36 = vpop.f32.mrb[54].mxu1 }
 0x15f   : > { %v1919_v22 = vadd.f32 %v2819_v3, %v1426_v63  ;;  %v1760_v15 = vpop.f32.mrb[55].mxu1 }
 0x160   : > { %v1956_v48 = vadd.f32 %v3876_v34, %v1917_v14  ;;  %v1918_v20 = vadd.f32 %v1745_v41, %v1425_v38 }
 0x161   : > { %v1958_v26 = vadd.f32 %v3876_v34, %v1919_v22 }
 0x162   : > { %vm1988_vm3 = vcmp.gt.f32.partialorder %v1956_v48, 0.0  ;;  %v2020_v13 = vmul.f32 0.2, %v1956_v48  ;;  %v1957_v46 = vadd.f32 %v3876_v34, %v1918_v20  ;;  %v2772_v1 = vpop.f32.mrb[52].mxu0 }
 0x163   : > { %vm1990_vm5 = vcmp.gt.f32.partialorder %v1958_v26, 0.0  ;;  %v2022_v40 = vmul.f32 0.2, %v1958_v26  ;;  %v1428_v56 = vadd.f32 %v2772_v1, %v3814_v31  ;;  %v1264_v28 = vpop.f32.mrb[53].mxu0 }
 0x164   : > { %v2052_v39 = vsel %vm1988_vm3, %v1956_v48, %v2020_v13  ;;  %vm1989_vm6 = vcmp.gt.f32.partialorder %v1957_v46, 0.0  ;;  %v2021_v60 = vmul.f32 0.2, %v1957_v46  ;;  %v1427_v29 = vadd.f32 %v1264_v28, %v3816_v54  ;;  %v2773_v12 = vpop.f32.mrb[54].mxu0  ;;  %v2826_v42 = vpop.f32.mrb[56].mxu1 }
 0x165   : > { %v2531_v4 = vpack.c.bf16 %v2052_v39, %v2052_v39  ;;  %v2054_v6 = vsel %vm1990_vm5, %v1958_v26, %v2022_v40  ;;  %v1921_v33 = vadd.f32 %v2822_v49, %v1428_v56  ;;  %v1429_v44 = vadd.f32 %v2773_v12, %v3818_v18  ;;  %v1267_v47 = vpop.f32.mrb[55].mxu0  ;;  %v1772_v3 = vpop.f32.mrb[57].mxu1 }
 0x166   : > { %v2533_v41 = vpack.c.bf16 %v2054_v6, %v2054_v6  ;;  %v2053_v24 = vsel %vm1989_vm6, %v1957_v46, %v2021_v60  ;;  %v1920_v5 = vadd.f32 %v1757_v9, %v1427_v29  ;;  %v2827_v7 = vpop.f32.mrb[58].mxu1 }
 0x167   : > { %2213 = vst.msk [vmem:[%s3889_s26] sm:$0xf] %vm2212_vm4, %v2531_v4  ;;  %v2532_v31 = vpack.c.bf16 %v2053_v24, %v2053_v24  ;;  %v1960_v54 = vadd.f32 %v3876_v34, %v1921_v33  ;;  %v1922_v19 = vadd.f32 %v2823_v36, %v1429_v44  ;;  %v1774_v49 = vpop.f32.mrb[59].mxu1 }
 0x168   : > { %2215 = vst.msk [vmem:[%s3889_s26 + $0x8] sm:$0xf] %vm2212_vm4, %v2533_v41  ;;  %v1959_v18 = vadd.f32 %v3876_v34, %v1920_v5 }
 0x169   : > { %2214 = vst.msk [vmem:[%s3889_s26 + $0x4] sm:$0xf] %vm2212_vm4, %v2532_v31  ;;  %vm1992_vm7 = vcmp.gt.f32.partialorder %v1960_v54, 0.0  ;;  %v2024_v63 = vmul.f32 0.2, %v1960_v54  ;;  %v1961_v8 = vadd.f32 %v3876_v34, %v1922_v19 }
 0x16a   : > { %vm1991_vm8 = vcmp.gt.f32.partialorder %v1959_v18, 0.0  ;;  %v2023_v9 = vmul.f32 0.2, %v1959_v18  ;;  %v2776_v14 = vpop.f32.mrb[56].mxu0 }
 0x16b   : > { %v2056_v38 = vsel %vm1992_vm7, %v1960_v54, %v2024_v63  ;;  %vm1993_vm9 = vcmp.gt.f32.partialorder %v1961_v8, 0.0  ;;  %v2025_v22 = vmul.f32 0.2, %v1961_v8  ;;  %v1431_v36 = vadd.f32 %v2776_v14, %v3820_v57  ;;  %v1279_v15 = vpop.f32.mrb[57].mxu0 }
 0x16c   : > { %v2535_v48 = vpack.c.bf16 %v2056_v38, %v2056_v38  ;;  %v2055_v20 = vsel %vm1991_vm8, %v1959_v18, %v2023_v9  ;;  %v2777_v26 = vpop.f32.mrb[58].mxu0  ;;  %v2830_v13 = vpop.f32.mrb[60].mxu1 }
 0x16d   : > { %v2534_v46 = vpack.c.bf16 %v2055_v20, %v2055_v20  ;;  %v2057_v1 = vsel %vm1993_vm9, %v1961_v8, %v2025_v22  ;;  %v1924_v40 = vadd.f32 %v2826_v42, %v1431_v36  ;;  %v1281_v56 = vpop.f32.mrb[59].mxu0  ;;  %v1786_v28 = vpop.f32.mrb[61].mxu1 }
 0x16e   : > { %2217 = vst.msk [vmem:[%s3889_s26 + $0x10] sm:$0xf] %vm2212_vm4, %v2535_v48  ;;  %v2536_v39 = vpack.c.bf16 %v2057_v1, %v2057_v1  ;;  %v1430_v60 = vadd.f32 %v1281_v56, %v3822_v11  ;;  %v2831_v29 = vpop.f32.mrb[62].mxu1 }
 0x16f   : > { %2216 = vst.msk [vmem:[%s3889_s26 + $0xc] sm:$0xf] %vm2212_vm4, %v2534_v46  ;;  %v1963_v57 = vadd.f32 %v3876_v34, %v1924_v40  ;;  %v1789_v12 = vpop.f32.mrb[63].mxu1 }
 0x170   : > { %2218 = vst.msk [vmem:[%s3889_s26 + $0x14] sm:$0xf] %vm2212_vm4, %v2536_v39  ;;  %v1923_v4 = vadd.f32 %v1774_v49, %v1430_v60 }
 0x171   : > { %vm1995_vm10 = vcmp.gt.f32.partialorder %v1963_v57, 0.0  ;;  %v2027_v6 = vmul.f32 0.2, %v1963_v57 }
 0x172   : > { %v1962_v42 = vadd.f32 %v3876_v34, %v1923_v4  ;;  %v2780_v33 = vpop.f32.mrb[60].mxu0 }
 0x173   : > { %v2059_v44 = vsel %vm1995_vm10, %v1963_v57, %v2027_v6  ;;  %v1293_v47 = vpop.f32.mrb[61].mxu0 }
 0x174   : > { %v2538_v3 = vpack.c.bf16 %v2059_v44, %v2059_v44  ;;  %vm1994_vm11 = vcmp.gt.f32.partialorder %v1962_v42, 0.0  ;;  %v2026_v11 = vmul.f32 0.2, %v1962_v42  ;;  %v1432_v41 = vadd.f32 %v1293_v47, %v3824_v37  ;;  %v2781_v24 = vpop.f32.mrb[62].mxu0  ;;  %v2834_v5 = vpop.f32.mrb[64].mxu1 }
 0x175   : > { %v1434_v7 = vadd.f32 %v2781_v24, %v3826_v23  ;;  %v1296_v31 = vpop.f32.mrb[63].mxu0  ;;  %v1801_v54 = vpop.f32.mrb[65].mxu1 }
 0x176   : > { %2220 = vst.msk [vmem:[%s3889_s26 + $0x1c] sm:$0xf] %vm2212_vm4, %v2538_v3  ;;  %v2058_v19 = vsel %vm1994_vm11, %v1962_v42, %v2026_v11  ;;  %v1925_v49 = vadd.f32 %v1786_v28, %v1432_v41  ;;  %v1433_v18 = vadd.f32 %v1296_v31, %v3828_v58  ;;  %v2835_v63 = vpop.f32.mrb[66].mxu1 }
 0x177   : > { %v2537_v8 = vpack.c.bf16 %v2058_v19, %v2058_v19  ;;  %v1927_v9 = vadd.f32 %v2831_v29, %v1434_v7  ;;  %v1804_v14 = vpop.f32.mrb[67].mxu1 }
 0x178   : > { %v1964_v38 = vadd.f32 %v3876_v34, %v1925_v49  ;;  %v1926_v37 = vadd.f32 %v1789_v12, %v1433_v18 }
 0x179   : > { %2219 = vst.msk [vmem:[%s3889_s26 + $0x18] sm:$0xf] %vm2212_vm4, %v2537_v8  ;;  %v1966_v22 = vadd.f32 %v3876_v34, %v1927_v9 }
 0x17a   : > { %vm1996_vm12 = vcmp.gt.f32.partialorder %v1964_v38, 0.0  ;;  %v2028_v23 = vmul.f32 0.2, %v1964_v38  ;;  %v1965_v36 = vadd.f32 %v3876_v34, %v1926_v37  ;;  %v2784_v15 = vpop.f32.mrb[64].mxu0 }
 0x17b   : > { %vm1998_vm13 = vcmp.gt.f32.partialorder %v1966_v22, 0.0  ;;  %v2030_v48 = vmul.f32 0.2, %v1966_v22  ;;  %v1436_v58 = vadd.f32 %v2784_v15, %v3830_v10  ;;  %v1308_v20 = vpop.f32.mrb[65].mxu0 }
 0x17c   : > { %v2060_v26 = vsel %vm1996_vm12, %v1964_v38, %v2028_v23  ;;  %vm1997_vm14 = vcmp.gt.f32.partialorder %v1965_v36, 0.0  ;;  %v2029_v13 = vmul.f32 0.2, %v1965_v36  ;;  %v1435_v46 = vadd.f32 %v1308_v20, %v3832_v30  ;;  %v2785_v1 = vpop.f32.mrb[66].mxu0  ;;  %v2838_v40 = vpop.f32.mrb[68].mxu1 }
 0x17d   : > { %v2539_v56 = vpack.c.bf16 %v2060_v26, %v2060_v26  ;;  %v2062_v28 = vsel %vm1998_vm13, %v1966_v22, %v2030_v48  ;;  %v1929_v39 = vadd.f32 %v2834_v5, %v1436_v58  ;;  %v1437_v60 = vadd.f32 %v2785_v1, %v3834_v55  ;;  %v1311_v29 = vpop.f32.mrb[67].mxu0  ;;  %v1816_v57 = vpop.f32.mrb[69].mxu1 }
 0x17e   : > { %v2541_v12 = vpack.c.bf16 %v2062_v28, %v2062_v28  ;;  %v2061_v10 = vsel %vm1997_vm14, %v1965_v36, %v2029_v13  ;;  %v1928_v4 = vadd.f32 %v1801_v54, %v1435_v46  ;;  %v2839_v6 = vpop.f32.mrb[70].mxu1 }
 0x17f   : > { %2221 = vst.msk [vmem:[%s3889_s26 + $0x20] sm:$0xf] %vm2212_vm4, %v2539_v56  ;;  %v2540_v42 = vpack.c.bf16 %v2061_v10, %v2061_v10  ;;  %v1968_v30 = vadd.f32 %v3876_v34, %v1929_v39  ;;  %v1930_v33 = vadd.f32 %v2835_v63, %v1437_v60  ;;  %v1818_v44 = vpop.f32.mrb[71].mxu1 }
 0x180   : > { %2223 = vst.msk [vmem:[%s3889_s26 + $0x28] sm:$0xf] %vm2212_vm4, %v2541_v12  ;;  %v1967_v47 = vadd.f32 %v3876_v34, %v1928_v4 }
 0x181   : > { %2222 = vst.msk [vmem:[%s3889_s26 + $0x24] sm:$0xf] %vm2212_vm4, %v2540_v42  ;;  %vm2000_vm15 = vcmp.gt.f32.partialorder %v1968_v30, 0.0  ;;  %v2032_v55 = vmul.f32 0.2, %v1968_v30  ;;  %v1969_v3 = vadd.f32 %v3876_v34, %v1930_v33 }
 0x182   : > { %vm1999_vm0 = vcmp.gt.f32.partialorder %v1967_v47, 0.0  ;;  %v2031_v11 = vmul.f32 0.2, %v1967_v47  ;;  %v2788_v41 = vpop.f32.mrb[68].mxu0 }
 0x183   : > { %v2064_v24 = vsel %vm2000_vm15, %v1968_v30, %v2032_v55  ;;  %vm2001_vm1 = vcmp.gt.f32.partialorder %v1969_v3, 0.0  ;;  %v2033_v5 = vmul.f32 0.2, %v1969_v3  ;;  %v1439_v7 = vadd.f32 %v2788_v41, %v3836_v51  ;;  %v1323_v31 = vpop.f32.mrb[69].mxu0 }
 0x184   : > { %v2543_v54 = vpack.c.bf16 %v2064_v24, %v2064_v24  ;;  %v2063_v19 = vsel %vm1999_vm0, %v1967_v47, %v2031_v11  ;;  %v2789_v49 = vpop.f32.mrb[70].mxu0  ;;  %v2842_v18 = vpop.f32.mrb[72].mxu1 }
 0x185   : > { %v2542_v63 = vpack.c.bf16 %v2063_v19, %v2063_v19  ;;  %v2065_v8 = vsel %vm2001_vm1, %v1969_v3, %v2033_v5  ;;  %v1932_v9 = vadd.f32 %v2838_v40, %v1439_v7  ;;  %v1325_v14 = vpop.f32.mrb[71].mxu0  ;;  %v1830_v38 = vpop.f32.mrb[73].mxu1 }
 0x186   : > { %2225 = vst.msk [vmem:[%s3889_s26 + $0x30] sm:$0xf] %vm2212_vm4, %v2543_v54  ;;  %v2544_v37 = vpack.c.bf16 %v2065_v8, %v2065_v8  ;;  %v1438_v22 = vadd.f32 %v1325_v14, %v3838_v50  ;;  %v2843_v23 = vpop.f32.mrb[74].mxu1 }
 0x187   : > { %2224 = vst.msk [vmem:[%s3889_s26 + $0x2c] sm:$0xf] %vm2212_vm4, %v2542_v63  ;;  %v1971_v51 = vadd.f32 %v3876_v34, %v1932_v9  ;;  %v1833_v36 = vpop.f32.mrb[75].mxu1 }
 0x188   : > { %2226 = vst.msk [vmem:[%s3889_s26 + $0x34] sm:$0xf] %vm2212_vm4, %v2544_v37  ;;  %v1931_v15 = vadd.f32 %v1818_v44, %v1438_v22 }
 0x189   : > { %vm2003_vm2 = vcmp.gt.f32.partialorder %v1971_v51, 0.0  ;;  %v2035_v48 = vmul.f32 0.2, %v1971_v51 }
 0x18a   : > { %v1970_v58 = vadd.f32 %v3876_v34, %v1931_v15  ;;  %v2792_v20 = vpop.f32.mrb[72].mxu0 }
 0x18b   : > { %v2067_v26 = vsel %vm2003_vm2, %v1971_v51, %v2035_v48  ;;  %v1337_v13 = vpop.f32.mrb[73].mxu0 }
 0x18c   : > { %v2546_v46 = vpack.c.bf16 %v2067_v26, %v2067_v26  ;;  %vm2002_vm3 = vcmp.gt.f32.partialorder %v1970_v58, 0.0  ;;  %v2034_v50 = vmul.f32 0.2, %v1970_v58  ;;  %v1440_v1 = vadd.f32 %v1337_v13, %v3840_v0  ;;  %v2793_v40 = vpop.f32.mrb[74].mxu0  ;;  %v2846_v56 = vpop.f32.mrb[76].mxu1 }
 0x18d   : > { %v1442_v28 = vadd.f32 %v2793_v40, %v3842_v35  ;;  %v1340_v39 = vpop.f32.mrb[75].mxu0  ;;  %v1845_v60 = vpop.f32.mrb[77].mxu1 }
 0x18e   : > { %2228 = vst.msk [vmem:[%s3889_s26 + $0x3c] sm:$0xf] %vm2212_vm4, %v2546_v46  ;;  %v2066_v29 = vsel %vm2002_vm3, %v1970_v58, %v2034_v50  ;;  %v1933_v57 = vadd.f32 %v1830_v38, %v1440_v1  ;;  %v1441_v12 = vadd.f32 %v1340_v39, %v3844_v25  ;;  %v2847_v10 = vpop.f32.mrb[78].mxu1 }
 0x18f   : > { %v2545_v4 = vpack.c.bf16 %v2066_v29, %v2066_v29  ;;  %v1935_v6 = vadd.f32 %v2843_v23, %v1442_v28  ;;  %v1848_v42 = vpop.f32.mrb[79].mxu1 }
 0x190   : > { %v1972_v30 = vadd.f32 %v3876_v34, %v1933_v57  ;;  %v1934_v0 = vadd.f32 %v1833_v36, %v1441_v12 }
 0x191   : > { %2227 = vst.msk [vmem:[%s3889_s26 + $0x38] sm:$0xf] %vm2212_vm4, %v2545_v4  ;;  %v1974_v33 = vadd.f32 %v3876_v34, %v1935_v6 }
 0x192   : > { %vm2004_vm5 = vcmp.gt.f32.partialorder %v1972_v30, 0.0  ;;  %v2036_v35 = vmul.f32 0.2, %v1972_v30  ;;  %v1973_v44 = vadd.f32 %v3876_v34, %v1934_v0  ;;  %v2796_v47 = vpop.f32.mrb[76].mxu0 }
 0x193   : > { %vm2006_vm6 = vcmp.gt.f32.partialorder %v1974_v33, 0.0  ;;  %v2038_v55 = vmul.f32 0.2, %v1974_v33  ;;  %v1444_v25 = vadd.f32 %v2796_v47, %v3846_v16  ;;  %v1352_v3 = vpop.f32.mrb[77].mxu0 }
 0x194   : > { %v2068_v11 = vsel %vm2004_vm5, %v1972_v30, %v2036_v35  ;;  %vm2005_vm7 = vcmp.gt.f32.partialorder %v1973_v44, 0.0  ;;  %v2037_v41 = vmul.f32 0.2, %v1973_v44  ;;  %v1443_v24 = vadd.f32 %v1352_v3, %v3848_v21  ;;  %v2797_v5 = vpop.f32.mrb[78].mxu0  ;;  %v2850_v7 = vpop.f32.mrb[80].mxu1 }
 0x195   : > { %v2547_v31 = vpack.c.bf16 %v2068_v11, %v2068_v11  ;;  %v2070_v54 = vsel %vm2006_vm6, %v1974_v33, %v2038_v55  ;;  %v1937_v19 = vadd.f32 %v2846_v56, %v1444_v25  ;;  %v1445_v49 = vadd.f32 %v2797_v5, %v3850_v17  ;;  %v1355_v18 = vpop.f32.mrb[79].mxu0  ;;  %v1860_v63 = vpop.f32.mrb[81].mxu1 }
 0x196   : > { %v2549_v8 = vpack.c.bf16 %v2070_v54, %v2070_v54  ;;  %v2069_v16 = vsel %vm2005_vm7, %v1973_v44, %v2037_v41  ;;  %v1936_v9 = vadd.f32 %v1845_v60, %v1443_v24  ;;  %v2851_v14 = vpop.f32.mrb[82].mxu1 }
 0x197   : > { %2229 = vst.msk [vmem:[%s3889_s26 + $0x40] sm:$0xf] %vm2212_vm4, %v2547_v31  ;;  %v2548_v38 = vpack.c.bf16 %v2069_v16, %v2069_v16  ;;  %v1976_v21 = vadd.f32 %v3876_v34, %v1937_v19  ;;  %v1938_v37 = vadd.f32 %v2847_v10, %v1445_v49  ;;  %v1862_v22 = vpop.f32.mrb[83].mxu1 }
 0x198   : > { %2231 = vst.msk [vmem:[%s3889_s26 + $0x48] sm:$0xf] %vm2212_vm4, %v2549_v8  ;;  %v1975_v23 = vadd.f32 %v3876_v34, %v1936_v9 }
 0x199   : > { %2230 = vst.msk [vmem:[%s3889_s26 + $0x44] sm:$0xf] %vm2212_vm4, %v2548_v38  ;;  %vm2008_vm8 = vcmp.gt.f32.partialorder %v1976_v21, 0.0  ;;  %v2040_v17 = vmul.f32 0.2, %v1976_v21  ;;  %v1977_v51 = vadd.f32 %v3876_v34, %v1938_v37 }
 0x19a   : > { %vm2007_vm9 = vcmp.gt.f32.partialorder %v1975_v23, 0.0  ;;  %v2039_v36 = vmul.f32 0.2, %v1975_v23  ;;  %v2800_v15 = vpop.f32.mrb[80].mxu0 }
 0x19b   : > { %v2072_v48 = vsel %vm2008_vm8, %v1976_v21, %v2040_v17  ;;  %vm2009_vm10 = vcmp.gt.f32.partialorder %v1977_v51, 0.0  ;;  %v2041_v58 = vmul.f32 0.2, %v1977_v51  ;;  %v1447_v20 = vadd.f32 %v2800_v15, %v3852_v59  ;;  %v1367_v26 = vpop.f32.mrb[81].mxu0 }
 0x19c   : > { %v2551_v13 = vpack.c.bf16 %v2072_v48, %v2072_v48  ;;  %v2071_v46 = vsel %vm2007_vm9, %v1975_v23, %v2039_v36  ;;  %v2801_v50 = vpop.f32.mrb[82].mxu0  ;;  %v2854_v1 = vpop.f32.mrb[84].mxu1 }
 0x19d   : > { %v2550_v40 = vpack.c.bf16 %v2071_v46, %v2071_v46  ;;  %v2073_v56 = vsel %vm2009_vm10, %v1977_v51, %v2041_v58  ;;  %v1940_v28 = vadd.f32 %v2850_v7, %v1447_v20  ;;  %v1369_v39 = vpop.f32.mrb[83].mxu0  ;;  %v1874_v60 = vpop.f32.mrb[85].mxu1 }
 0x19e   : > { %2233 = vst.msk [vmem:[%s3889_s26 + $0x50] sm:$0xf] %vm2212_vm4, %v2551_v13  ;;  %v2552_v29 = vpack.c.bf16 %v2073_v56, %v2073_v56  ;;  %v1446_v57 = vadd.f32 %v1369_v39, %v3854_v43  ;;  %v2855_v12 = vpop.f32.mrb[86].mxu1 }
 0x19f   : > { %2232 = vst.msk [vmem:[%s3889_s26 + $0x4c] sm:$0xf] %vm2212_vm4, %v2550_v40  ;;  %v1979_v59 = vadd.f32 %v3876_v34, %v1940_v28  ;;  %v1877_v10 = vpop.f32.mrb[87].mxu1 }
 0x1a0   : > { %2234 = vst.msk [vmem:[%s3889_s26 + $0x54] sm:$0xf] %vm2212_vm4, %v2552_v29  ;;  %v1939_v4 = vadd.f32 %v1862_v22, %v1446_v57 }
 0x1a1   : > { %vm2011_vm11 = vcmp.gt.f32.partialorder %v1979_v59, 0.0  ;;  %v2043_v6 = vmul.f32 0.2, %v1979_v59 }
 0x1a2   : > { %v1978_v42 = vadd.f32 %v3876_v34, %v1939_v4  ;;  %v2804_v30 = vpop.f32.mrb[84].mxu0 }
 0x1a3   : > { %v2075_v0 = vsel %vm2011_vm11, %v1979_v59, %v2043_v6  ;;  %v1381_v33 = vpop.f32.mrb[85].mxu0 }
 0x1a4   : > { %v2554_v35 = vpack.c.bf16 %v2075_v0, %v2075_v0  ;;  %vm2010_vm12 = vcmp.gt.f32.partialorder %v1978_v42, 0.0  ;;  %v2042_v43 = vmul.f32 0.2, %v1978_v42  ;;  %v1448_v44 = vadd.f32 %v1381_v33, %v3856_v27  ;;  %v2805_v47 = vpop.f32.mrb[86].mxu0  ;;  %v2858_v55 = vpop.f32.mrb[88].mxu1 }
 0x1a5   : > { %v1450_v25 = vadd.f32 %v2805_v47, %v3858_v45  ;;  %v1384_v3 = vpop.f32.mrb[87].mxu0  ;;  %v1889_v11 = vpop.f32.mrb[89].mxu1 }
 0x1a6   : > { %2236 = vst.msk [vmem:[%s3889_s26 + $0x5c] sm:$0xf] %vm2212_vm4, %v2554_v35  ;;  %v2074_v41 = vsel %vm2010_vm12, %v1978_v42, %v2042_v43  ;;  %v1941_v24 = vadd.f32 %v1874_v60, %v1448_v44  ;;  %v1449_v5 = vadd.f32 %v1384_v3, %v3860_v53  ;;  %v2859_v7 = vpop.f32.mrb[90].mxu1 }
 0x1a7   : > { %v2553_v31 = vpack.c.bf16 %v2074_v41, %v2074_v41  ;;  %v1943_v54 = vadd.f32 %v2855_v12, %v1450_v25  ;;  %v1892_v19 = vpop.f32.mrb[91].mxu1 }
 0x1a8   : > { %v1980_v49 = vadd.f32 %v3876_v34, %v1941_v24  ;;  %v1942_v27 = vadd.f32 %v1877_v10, %v1449_v5 }
 0x1a9   : > { %2235 = vst.msk [vmem:[%s3889_s26 + $0x58] sm:$0xf] %vm2212_vm4, %v2553_v31  ;;  %v1982_v18 = vadd.f32 %v3876_v34, %v1943_v54 }
 0x1aa   : > { %vm2012_vm13 = vcmp.gt.f32.partialorder %v1980_v49, 0.0  ;;  %v2044_v45 = vmul.f32 0.2, %v1980_v49  ;;  %v1981_v63 = vadd.f32 %v3876_v34, %v1942_v27  ;;  %v2808_v8 = vpop.f32.mrb[88].mxu0 }
 0x1ab   : > { %vm2014_vm14 = vcmp.gt.f32.partialorder %v1982_v18, 0.0  ;;  %v2046_v16 = vmul.f32 0.2, %v1982_v18  ;;  %v1452_v53 = vadd.f32 %v2808_v8, %v3862_v62  ;;  %v1396_v9 = vpop.f32.mrb[89].mxu0 }
 0x1ac   : > { %v2076_v14 = vsel %vm2012_vm13, %v1980_v49, %v2044_v45  ;;  %vm2013_vm15 = vcmp.gt.f32.partialorder %v1981_v63, 0.0  ;;  %v2045_v38 = vmul.f32 0.2, %v1981_v63  ;;  %v1451_v21 = vadd.f32 %v1396_v9, %v3864_v2  ;;  %v2809_v37 = vpop.f32.mrb[90].mxu0  ;;  %v2862_v22 = vpop.f32.mrb[92].mxu1 }
 0x1ad   : > { %v2555_v23 = vpack.c.bf16 %v2076_v14, %v2076_v14  ;;  %v2078_v17 = vsel %vm2014_vm14, %v1982_v18, %v2046_v16  ;;  %v1945_v51 = vadd.f32 %v2858_v55, %v1452_v53  ;;  %v1453_v36 = vadd.f32 %v2809_v37, %v3866_v61  ;;  %v1399_v15 = vpop.f32.mrb[91].mxu0  ;;  %v1904_v48 = vpop.f32.mrb[93].mxu1 }
 0x1ae   : > { %v2557_v58 = vpack.c.bf16 %v2078_v17, %v2078_v17  ;;  %v2077_v62 = vsel %vm2013_vm15, %v1981_v63, %v2045_v38  ;;  %v1944_v20 = vadd.f32 %v1889_v11, %v1451_v21  ;;  %v2863_v26 = vpop.f32.mrb[94].mxu1 }
 0x1af   : > { %2237 = vst.msk [vmem:[%s3889_s26 + $0x60] sm:$0xf] %vm2212_vm4, %v2555_v23  ;;  %v2556_v13 = vpack.c.bf16 %v2077_v62, %v2077_v62  ;;  %v1984_v2 = vadd.f32 %v3876_v34, %v1945_v51  ;;  %v1946_v46 = vadd.f32 %v2859_v7, %v1453_v36  ;;  %v1906_v50 = vpop.f32.mrb[95].mxu1 }
 0x1b0   : > { %2239 = vst.msk [vmem:[%s3889_s26 + $0x68] sm:$0xf] %vm2212_vm4, %v2557_v58  ;;  %v1983_v1 = vadd.f32 %v3876_v34, %v1944_v20 }
 0x1b1   : > { %2238 = vst.msk [vmem:[%s3889_s26 + $0x64] sm:$0xf] %vm2212_vm4, %v2556_v13  ;;  %vm2016_vm0 = vcmp.gt.f32.partialorder %v1984_v2, 0.0  ;;  %v2048_v61 = vmul.f32 0.2, %v1984_v2  ;;  %v1985_v40 = vadd.f32 %v3876_v34, %v1946_v46 }
 0x1b2   : > { %vm2015_vm1 = vcmp.gt.f32.partialorder %v1983_v1, 0.0  ;;  %v2047_v56 = vmul.f32 0.2, %v1983_v1  ;;  %v2812_v28 = vpop.f32.mrb[92].mxu0 }
 0x1b3   : > { %v2080_v39 = vsel %vm2016_vm0, %v1984_v2, %v2048_v61  ;;  %vm2017_vm2 = vcmp.gt.f32.partialorder %v1985_v40, 0.0  ;;  %v2049_v60 = vmul.f32 0.2, %v1985_v40  ;;  %v1455_v29 = vadd.f32 %v2812_v28, %v3868_v52  ;;  %v1411_v57 = vpop.f32.mrb[93].mxu0 }
 0x1b4   : > { %v2559_v12 = vpack.c.bf16 %v2080_v39, %v2080_v39  ;;  %v2079_v59 = vsel %vm2015_vm1, %v1983_v1, %v2047_v56  ;;  %v2813_v10 = vpop.f32.mrb[94].mxu0 }
 0x1b5   : > { %v2558_v4 = vpack.c.bf16 %v2079_v59, %v2079_v59  ;;  %v2081_v6 = vsel %vm2017_vm2, %v1985_v40, %v2049_v60  ;;  %v1948_v42 = vadd.f32 %v2862_v22, %v1455_v29  ;;  %v1413_v30 = vpop.f32.mrb[95].mxu0 }
 0x1b6   : > { %2241 = vst.msk [vmem:[%s3889_s26 + $0x70] sm:$0xf] %vm2212_vm4, %v2559_v12  ;;  %v2560_v0 = vpack.c.bf16 %v2081_v6, %v2081_v6  ;;  %v1454_v33 = vadd.f32 %v1413_v30, %v3870_v32 }
 0x1b7   : > { %2240 = vst.msk [vmem:[%s3889_s26 + $0x6c] sm:$0xf] %vm2212_vm4, %v2558_v4  ;;  %v1987_v52 = vadd.f32 %v3876_v34, %v1948_v42 }
 0x1b8   : > { %2242 = vst.msk [vmem:[%s3889_s26 + $0x74] sm:$0xf] %vm2212_vm4, %v2560_v0  ;;  %v1947_v35 = vadd.f32 %v1906_v50, %v1454_v33 }
 0x1b9   : > { %vm2019_vm3 = vcmp.gt.f32.partialorder %v1987_v52, 0.0  ;;  %v2051_v43 = vmul.f32 0.2, %v1987_v52 }
 0x1ba   : > { %v1986_v44 = vadd.f32 %v3876_v34, %v1947_v35 }
 0x1bb   : > { %v2083_v47 = vsel %vm2019_vm3, %v1987_v52, %v2051_v43 }
 0x1bc   : > { %v2562_v55 = vpack.c.bf16 %v2083_v47, %v2083_v47  ;;  %vm2018_vm5 = vcmp.gt.f32.partialorder %v1986_v44, 0.0  ;;  %v2050_v32 = vmul.f32 0.2, %v1986_v44 }
 0x1be   : > { %2244 = vst.msk [vmem:[%s3889_s26 + $0x7c] sm:$0xf] %vm2212_vm4, %v2562_v55  ;;  %v2082_v25 = vsel %vm2018_vm5, %v1986_v44, %v2050_v32 }
 0x1bf   : > { %v2561_v34 = vpack.c.bf16 %v2082_v25, %v2082_v25 }
 0x1c1   : > { %2243 = vst.msk [vmem:[%s3889_s26 + $0x78] sm:$0xf] %vm2212_vm4, %v2561_v34 }
 0x1c2   : > { %2989 = shalt.err (!%p2986_p5)
}
 0x1c3   : > { %s2990_s9 = scalar_lea.hbm %s4013_s4, 2048  ;;  %s2994_s18 = scalar_lea.hbm %s4070_s3, 4096 }
 0x1c4   : > { %p2991_p6 = scmp.ne.s32.totalorder %s4013_s4, %s2990_s9  ;;  %p2995_p10 = scmp.lt.u32.totalorder %s4013_s4, %s4070_s3 }
 0x1c5   : > { %p2996_p11 = scmp.lt.u32.totalorder %s2994_s18, %s2990_s9  ;;  %p2998_p13 = scmp.lt.u32.totalorder %s2990_s9, %s4013_s4 }
 0x1c6   : > { %p2992_p7 = pnand %p2991_p6, %p3119_p4 }
 0x1c7   : > { %p2997_p12 = por %p2996_p11, %p2995_p10 }
 0x1c8   : > { %p2993_p9 = pneg %p2992_p7 }
 0x1c9   : > { %p2999_p0 = por %p2998_p13, %p2997_p12 }
 0x1cb   : > { %p3000_p1 = pnand %p2999_p0, %p2993_p9 }
 0x1cd   : > { %3003 = shalt.err (!%p3000_p1)
}
 0x1ce   : > { %s3057_s23 = smov 64   ;;  %s3058_s26 = smov 4  }
 0x1cf   : > { %2869 = dma.vmem_to_hbm [thread:$0]  (%p3119_p4), %s4015_s28, 2048, %s4013_s4, %s4021_s15, %s3057_s23, %s3057_s23, %s3058_s26  }
 0x1d0 PF: > { %p2875_p2 = scmp.ge.s32.totalorder %s3054_s17, 2  ;;  %s2277_s27 = sand.u32 1, %s3034_s12  }
 0x1d1   : > { %s2278_s29 = scalar_lea.sflag [#allocation3], %s2277_s27 }
 0x1d2   : > { %p2872_p3 = pnand %p2875_p2, %p3126_p8 }
 0x1d4   : > { %3029 = dma.done.wait (!%p2872_p3), %s2278_s29, 2048  }
 0x1d5   : > { %3031 = vsyncadd (!%p2872_p3), %s2278_s29, 4294965248  ;;  %s16_s17 = sadd.s32 1, %s3054_s17   ;;  %s4142_s12 = smov %s3038_s13 }
 0x1d6   : > { %p13_p5 = scmp.ge.s32.totalorder %s16_s17, 4   ;;  %s4143_s13 = smov %s3042_s14 }
 0x1d7   : > { %s4144_s14 = smov %s3132_s25  ;;  %s4145_s15 = smov %s3050_s16 }
 0x1d8   : > { %s4146_s16 = smov %s4148_s20  ;;  %15 = sbr.rel (!%p13_p5) target bundleno = 4 (0x4), region = 71 }
 0x1df   :  { %2283 = vsyncpa [#allocation3], 1 }
 0x1e0   :  { %2285 = vsyncpa [#allocation3 + $0x1], 1 }

</bundles_post_ra>
